<compile_context>
chip_gen: v5e
topology: v5e:2x2
jax: 0.10.0
libtpu: 0.0.40
codegen_flags: <defaults>
</compile_context>

<pallas_src>
import functools

import jax
import jax.numpy as jnp
from jax.experimental import pallas as pl
from jax.experimental.pallas import tpu as pltpu

ATOM_FDIM = 133
BOND_FDIM = 14
LANE = 128


def _round_up(x, m):
    return (x + m - 1) // m * m


def _row_tile(m, tmax=256):
    """Row tile: full (8-rounded) extent for small m, else tmax (MXU-height).
    tmax=256 targets v6e/v7x MXU; 128 is equally fine on v5e."""
    m8 = _round_up(max(int(m), 1), 8)
    return m8 if m8 < tmax else tmax


def _pad2d(x, rows, cols):
    r, c = x.shape
    return jnp.pad(x.astype(jnp.float32), ((0, rows - r), (0, cols - c)))


# --------------------------------------------------------------------------
# Kernel 1: single-K-block linear  y = [relu](x @ w + b)
#   Every matmul in this model has K <= 384, so no K loop / accumulator.
# --------------------------------------------------------------------------
def _linear_kernel(x_ref, w_ref, b_ref, o_ref, *, relu):
    y = jnp.dot(x_ref[...], w_ref[...], preferred_element_type=jnp.float32)
    y = y + b_ref[...]
    if relu:
        y = jnp.maximum(y, 0.0)
    o_ref[...] = y


def pallas_linear_padded(x_p, w_p, b_p, *, relu, tm):
    """x_p:[Mp,Kp] @ w_p:[Kp,Np] + b_p:[1,Np]; all dims pre-padded (lane 128)."""
    Mp, Kp = x_p.shape
    Kp2, Np = w_p.shape
    assert Kp == Kp2 and Mp % tm == 0
    return pl.pallas_call(
        functools.partial(_linear_kernel, relu=relu),
        out_shape=jax.ShapeDtypeStruct((Mp, Np), jnp.float32),
        grid=(Mp // tm,),
        in_specs=[
            pl.BlockSpec((tm, Kp), lambda i: (i, 0)),
            pl.BlockSpec((Kp, Np), lambda i: (0, 0)),
            pl.BlockSpec((1, Np), lambda i: (0, 0)),
        ],
        out_specs=pl.BlockSpec((tm, Np), lambda i: (i, 0)),
        compiler_params=pltpu.CompilerParams(
            dimension_semantics=("parallel",)),
    )(x_p, w_p, b_p)


# --------------------------------------------------------------------------
# Kernel 2: fused ResidualLayer   out = v + relu(l2(relu(l1(v_clone))))
#   Both 128x128 weights live in one block; intermediate stays in VMEM/vregs.
# --------------------------------------------------------------------------
def _residual_kernel(v_ref, vc_ref, w1_ref, b1_ref, w2_ref, b2_ref, o_ref):
    h = jnp.dot(vc_ref[...], w1_ref[...],
                preferred_element_type=jnp.float32) + b1_ref[...]
    h = jnp.maximum(h, 0.0)
    h = jnp.dot(h, w2_ref[...],
                preferred_element_type=jnp.float32) + b2_ref[...]
    h = jnp.maximum(h, 0.0)
    # TODO(synk): nn.Dropout treated as identity (inference mode).
    o_ref[...] = v_ref[...] + h


def pallas_residual(v_p, vc_p, w1, b1, w2, b2, *, tm):
    Mp, HP = v_p.shape
    return pl.pallas_call(
        _residual_kernel,
        out_shape=jax.ShapeDtypeStruct((Mp, HP), jnp.float32),
        grid=(Mp // tm,),
        in_specs=[
            pl.BlockSpec((tm, HP), lambda i: (i, 0)),
            pl.BlockSpec((tm, HP), lambda i: (i, 0)),
            pl.BlockSpec((HP, HP), lambda i: (0, 0)),
            pl.BlockSpec((1, HP), lambda i: (0, 0)),
            pl.BlockSpec((HP, HP), lambda i: (0, 0)),
            pl.BlockSpec((1, HP), lambda i: (0, 0)),
        ],
        out_specs=pl.BlockSpec((tm, HP), lambda i: (i, 0)),
        compiler_params=pltpu.CompilerParams(
            dimension_semantics=("parallel",)),
    )(v_p, vc_p, w1, b1, w2, b2)


# --------------------------------------------------------------------------
# Kernel 3: attention scores, lane-dense output.
#   att_full[t, c] = exp(LeakyReLU_0.2( sum_{i in head(c)} q[t,i]*k[t,i] ))
#   The 0/1 block-diagonal matrix RB performs the per-head reduce AND the
#   broadcast back to the head's dh lanes in a single MXU pass, so the
#   result written to HBM is a full [T, 128] lane-dense tensor.
#   NOTE: matches the reference exp(LeakyReLU(.)) — no max-subtraction.
# --------------------------------------------------------------------------
def _att_score_kernel(q_ref, k_ref, rb_ref, o_ref):
    p = q_ref[...] * k_ref[...]
    s = jnp.dot(p, rb_ref[...], preferred_element_type=jnp.float32)
    s = jnp.where(s > 0.0, s, 0.2 * s)          # LeakyReLU(0.2)
    o_ref[...] = jnp.exp(s)


def pallas_att_scores(q_kj, k_ji, rb, *, tt):
    Tp, HP = q_kj.shape
    return pl.pallas_call(
        _att_score_kernel,
        out_shape=jax.ShapeDtypeStruct((Tp, HP), jnp.float32),
        grid=(Tp // tt,),
        in_specs=[
            pl.BlockSpec((tt, HP), lambda i: (i, 0)),
            pl.BlockSpec((tt, HP), lambda i: (i, 0)),
            pl.BlockSpec((HP, HP), lambda i: (0, 0)),
        ],
        out_specs=pl.BlockSpec((tt, HP), lambda i: (i, 0)),
        compiler_params=pltpu.CompilerParams(
            dimension_semantics=("parallel",)),
    )(q_kj, k_ji, rb)


# --------------------------------------------------------------------------
# Kernel 4: apply attention  v_att = v_kj * att_full / att_sum_full
# --------------------------------------------------------------------------
def _att_apply_kernel(v_ref, att_ref, asum_ref, o_ref):
    o_ref[...] = (v_ref[...] * att_ref[...]
                  * pl.reciprocal(asum_ref[...], approx=True))


def pallas_att_apply(v_kj, att_full, att_sum, *, tt):
    Tp, HP = v_kj.shape
    return pl.pallas_call(
        _att_apply_kernel,
        out_shape=jax.ShapeDtypeStruct((Tp, HP), jnp.float32),
        grid=(Tp // tt,),
        in_specs=[
            pl.BlockSpec((tt, HP), lambda i: (i, 0)),
            pl.BlockSpec((tt, HP), lambda i: (i, 0)),
            pl.BlockSpec((tt, HP), lambda i: (i, 0)),
        ],
        out_specs=pl.BlockSpec((tt, HP), lambda i: (i, 0)),
        compiler_params=pltpu.CompilerParams(
            dimension_semantics=("parallel",)),
    )(v_kj, att_full, att_sum)


# --------------------------------------------------------------------------
# Parameters (deterministic synthetic init, PyTorch (out,in) layout)
# --------------------------------------------------------------------------
def init_params(key, hidden_dim, radius):
    num_att = radius - 1
    keys = iter(jax.random.split(key, 4 + 10 * max(num_att, 1)))

    def dense(out_d, in_d, bias):
        w = jax.random.normal(next(keys), (out_d, in_d), jnp.float32) / jnp.sqrt(
            jnp.float32(in_d))
        b = (jax.random.normal(next(keys), (out_d,), jnp.float32) * 0.01
             ) if bias else None
        return w, b

    params = {}
    params['W_i'], _ = dense(hidden_dim, ATOM_FDIM + BOND_FDIM, False)
    layers = []
    for _ in range(num_att):
        wv, _ = dense(hidden_dim, hidden_dim, False)
        wq, _ = dense(hidden_dim, hidden_dim, False)
        wk, _ = dense(hidden_dim, hidden_dim, False)
        l1w, l1b = dense(hidden_dim, hidden_dim, True)
        l2w, l2b = dense(hidden_dim, hidden_dim, True)
        layers.append(dict(wv=wv, wq=wq, wk=wk, l1w=l1w, l1b=l1b,
                           l2w=l2w, l2b=l2b))
    params['att'] = layers
    params['W_o_w'], params['W_o_b'] = dense(hidden_dim, ATOM_FDIM + hidden_dim,
                                             True)
    return params


def prepare_params(raw, hidden_dim, num_heads):
    """Pad / transpose / fuse all weights ONCE (PyTorch (out,in) -> (in,out))."""
    H = hidden_dim
    assert H % num_heads == 0, "hidden_dim must be divisible by num_heads"
    HP = _round_up(H, LANE)
    dh = H // num_heads

    pp = {}
    ki = _round_up(ATOM_FDIM + BOND_FDIM, LANE)            # 256
    pp['W_i'] = _pad2d(raw['W_i'].T, ki, HP)

    # per-head reduce + broadcast matrix: RB[i, j] = 1 iff i,j < H, same head
    idx = jnp.arange(HP)
    hi = jnp.where(idx < H, idx // dh, -1)
    hj = jnp.where(idx < H, idx // dh, -2)
    pp['RB'] = (hi[:, None] == hj[None, :]).astype(jnp.float32)

    pp['zb_h'] = jnp.zeros((1, HP), jnp.float32)
    pp['zb_3h'] = jnp.zeros((1, 3 * HP), jnp.float32)

    layers = []
    for lp in raw['att']:
        wqkv = jnp.zeros((HP, 3 * HP), jnp.float32)
        wqkv = wqkv.at[:H, 0:H].set(lp['wq'].T)
        wqkv = wqkv.at[:H, HP:HP + H].set(lp['wk'].T)
        wqkv = wqkv.at[:H, 2 * HP:2 * HP + H].set(lp['wv'].T)
        layers.append(dict(
            W_qkv=wqkv,
            W1=_pad2d(lp['l1w'].T, HP, HP),
            b1=_pad2d(lp['l1b'][None, :], 1, HP),
            W2=_pad2d(lp['l2w'].T, HP, HP),
            b2=_pad2d(lp['l2b'][None, :], 1, HP),
        ))
    pp['att'] = layers

    ko = _round_up(ATOM_FDIM + H, LANE)
    pp['W_o'] = _pad2d(raw['W_o_w'].T, ko, HP)
    pp['b_o'] = _pad2d(raw['W_o_b'][None, :], 1, HP)
    return pp


# --------------------------------------------------------------------------
# Forward pass (matches DMPNN_Encoder.forward semantics, inference mode)
# --------------------------------------------------------------------------
def dmpnn_forward(pp, atom_feat, edge_feat, src, dst, idx_kj, idx_ji,
                  *, hidden_dim):
    H = hidden_dim
    HP = pp['RB'].shape[0]
    N = atom_feat.shape[0]
    E = edge_feat.shape[0]
    T = idx_kj.shape[0]

    tm_e = _row_tile(E)
    Ep = _round_up(E, tm_e)
    tt = _row_tile(T, tmax=1024)
    Tp = _round_up(T, tt)
    tm_n = _row_tile(N)
    Nr = _round_up(N, tm_n)

    # G.apply_edges: initial_feature = concat(src atom_feature, edge_feature)
    init_feat = jnp.concatenate([atom_feat[src].astype(jnp.float32),
                                 edge_feat.astype(jnp.float32)], axis=1)   # [E,147]
    x0 = _pad2d(init_feat, Ep, pp['W_i'].shape[0])                         # [Ep,256]
    feats_p = pallas_linear_padded(x0, pp['W_i'], pp['zb_h'],
                                   relu=True, tm=tm_e)                     # [Ep,HP]

    # Index plumbing, padded once. Padded triplets/edges scatter to an
    # out-of-range segment id and are dropped by segment_sum.
    idx_kj_p = jnp.pad(idx_kj.astype(jnp.int32), (0, Tp - T))
    idx_ji_p = jnp.pad(idx_ji.astype(jnp.int32), (0, Tp - T))
    seg_ji_p = jnp.pad(idx_ji.astype(jnp.int32), (0, Tp - T),
                       constant_values=Ep)
    dst_p = jnp.pad(dst.astype(jnp.int32), (0, Ep - E), constant_values=N)

    for lp in pp['att']:
        # fused q|k|v projection: one MXU pass over feats
        qkv = pallas_linear_padded(feats_p, lp['W_qkv'], pp['zb_3h'],
                                   relu=False, tm=tm_e)                    # [Ep,3HP]
        q_p = qkv[:, 0:HP]
        k_p = qkv[:, HP:2 * HP]
        v_p = qkv[:, 2 * HP:3 * HP]

        # TODO(synk): arbitrary-row gathers/scatters stay in XLA; a rectangular
        # BlockSpec cannot express them and per-row manual DMA is slower here.
        q_kj = q_p[idx_kj_p]                                               # [Tp,HP]
        k_ji = k_p[idx_ji_p]                                               # [Tp,HP]
        v_kj = v_p[idx_kj_p]                                               # [Tp,HP]

        att_full = pallas_att_scores(q_kj, k_ji, pp['RB'], tt=tt)          # [Tp,HP]
        att_all = jax.ops.segment_sum(att_full, seg_ji_p,
                                      num_segments=E)                      # [E,HP]
        att_sum = att_all[idx_ji_p]                                        # [Tp,HP]
        v_att = pallas_att_apply(v_kj, att_full, att_sum, tt=tt)           # [Tp,HP]

        # v_clone = v.index_add_(idx_ji, v_att) - v == scatter-sum of v_att
        v_clone_p = jax.ops.segment_sum(v_att, seg_ji_p,
                                        num_segments=Ep)                   # [Ep,HP]

        # fused ResidualLayer: feats = v + relu(l2(relu(l1(v_clone))))
        feats_p = pallas_residual(v_p, v_clone_p, lp['W1'], lp['b1'],
                                  lp['W2'], lp['b2'], tm=tm_e)             # [Ep,HP]

    # update_all(copy_e, sum): sum edge feats into destination nodes
    feats_sum = jax.ops.segment_sum(feats_p, dst_p, num_segments=N)        # [N,HP]
    a_input = jnp.concatenate([atom_feat.astype(jnp.float32),
                               feats_sum[:, :H]], axis=1)                  # [N,133+H]
    a_p = _pad2d(a_input, Nr, pp['W_o'].shape[0])
    out_p = pallas_linear_padded(a_p, pp['W_o'], pp['b_o'],
                                 relu=True, tm=tm_n)                       # [Nr,HP]
    return out_p[:N, :H]


if __name__ == "__main__":
    key = jax.random.PRNGKey(0)
    hidden_dim, radius, p_dropout = 32, 3, 0.1     # 2 attention layers, 8 heads
    num_heads = 8
    N, E, T = 12, 24, 40                           # atoms, directed bonds, triplets

    kp, ka, ke, ks, kd, k1, k2 = jax.random.split(key, 7)
    raw = init_params(kp, hidden_dim, radius)
    pp = prepare_params(raw, hidden_dim, num_heads)   # pad/transpose/fuse once

    atom_feat = jax.random.normal(ka, (N, ATOM_FDIM), jnp.float32)
    edge_feat = jax.random.normal(ke, (E, BOND_FDIM), jnp.float32)
    src = jax.random.randint(ks, (E,), 0, N)
    dst = jax.random.randint(kd, (E,), 0, N)
    idx_kj = jax.random.randint(k1, (T,), 0, E)
    idx_ji = jax.random.randint(k2, (T,), 0, E)

    fwd = jax.jit(functools.partial(dmpnn_forward, hidden_dim=hidden_dim))
    out = fwd(pp, atom_feat, edge_feat, src, dst, idx_kj, idx_ji)
    jax.block_until_ready(out)

    assert out.shape == (N, hidden_dim)
    assert bool(jnp.all(jnp.isfinite(out)))
    print("KERNEL_OK")
</pallas_src>

<mosaic_0001>
module attributes {stable_mosaic.version = 11 : i64} {
  func.func @_linear_kernel(%arg0: i32, %arg1: memref<24x256xf32, #tpu.memory_space<vmem>>, %arg2: memref<256x128xf32, #tpu.memory_space<vmem>>, %arg3: memref<1x128xf32, #tpu.memory_space<vmem>>, %arg4: memref<24x128xf32, #tpu.memory_space<vmem>>) attributes {dimension_semantics = [#tpu.dimension_semantics<parallel>], iteration_bounds = array<i64: 1>, scalar_prefetch = 0 : i64, scratch_operands = 0 : i64, tpu.core_type = #tpu.core_type<tc>, window_params = [{transform_indices = @transform_0, window_bounds = array<i64: 24, 256>}, {pipeline_mode = #tpu.pipeline_mode<synchronous>, transform_indices = @transform_1, window_bounds = array<i64: 256, 128>}, {pipeline_mode = #tpu.pipeline_mode<synchronous>, transform_indices = @transform_2, window_bounds = array<i64: 1, 128>}, {transform_indices = @transform_3, window_bounds = array<i64: 24, 128>}]} {
    %c0 = arith.constant 0 : index
    %c0_0 = arith.constant 0 : index
    %0 = vector.load %arg1[%c0, %c0_0] : memref<24x256xf32, #tpu.memory_space<vmem>>, vector<24x256xf32>
    %c0_1 = arith.constant 0 : index
    %c0_2 = arith.constant 0 : index
    %1 = vector.load %arg2[%c0_1, %c0_2] : memref<256x128xf32, #tpu.memory_space<vmem>>, vector<256x128xf32>
    %cst = arith.constant dense<0.000000e+00> : vector<24x128xf32>
    %2 = tpu.matmul %0, %1, %cst {dimension_numbers = #tpu.dot_dimension_numbers<[1], [0], [0], [1], [0, 0, 1, 1], [], []>} : vector<24x256xf32>, vector<256x128xf32>, vector<24x128xf32> -> vector<24x128xf32>
    %c0_3 = arith.constant 0 : index
    %c0_4 = arith.constant 0 : index
    %3 = vector.load %arg3[%c0_3, %c0_4] : memref<1x128xf32, #tpu.memory_space<vmem>>, vector<1x128xf32>
    %4 = vector.broadcast %3 : vector<1x128xf32> to vector<24x128xf32>
    %5 = arith.addf %2, %4 : vector<24x128xf32>
    %cst_5 = arith.constant 0.000000e+00 : f32
    %6 = vector.broadcast %cst_5 : f32 to vector<24x128xf32>
    %7 = arith.maximumf %5, %6 : vector<24x128xf32>
    %c0_6 = arith.constant 0 : index
    %c0_7 = arith.constant 0 : index
    %8 = vector.load %arg4[%c0_6, %c0_7] : memref<24x128xf32, #tpu.memory_space<vmem>>, vector<24x128xf32>
    tpu.vector_store %arg4[%c0_6, %c0_7], %7 {strides = array<i32>} : memref<24x128xf32, #tpu.memory_space<vmem>>, vector<24x128xf32>,
    return
  }
  func.func @transform_0(%arg0: i32) -> (i32, i32) {
    %c0_i32 = arith.constant 0 : i32
    %c0_i32_0 = arith.constant 0 : i32
    return %arg0, %c0_i32 : i32, i32
  }
  func.func @transform_1(%arg0: i32) -> (i32, i32) {
    %c0_i32 = arith.constant 0 : i32
    %c0_i32_0 = arith.constant 0 : i32
    %c0_i32_1 = arith.constant 0 : i32
    return %c0_i32, %c0_i32_0 : i32, i32
  }
  func.func @transform_2(%arg0: i32) -> (i32, i32) {
    %c0_i32 = arith.constant 0 : i32
    %c0_i32_0 = arith.constant 0 : i32
    %c0_i32_1 = arith.constant 0 : i32
    return %c0_i32, %c0_i32_0 : i32, i32
  }
  func.func @transform_3(%arg0: i32) -> (i32, i32) {
    %c0_i32 = arith.constant 0 : i32
    %c0_i32_0 = arith.constant 0 : i32
    return %arg0, %c0_i32 : i32, i32
  }
}

module attributes {stable_mosaic.version = 11 : i64} {
  func.func @_linear_kernel(%arg0: i32, %arg1: memref<24x128xf32, #tpu.memory_space<vmem>>, %arg2: memref<128x384xf32, #tpu.memory_space<vmem>>, %arg3: memref<1x384xf32, #tpu.memory_space<vmem>>, %arg4: memref<24x384xf32, #tpu.memory_space<vmem>>) attributes {dimension_semantics = [#tpu.dimension_semantics<parallel>], iteration_bounds = array<i64: 1>, scalar_prefetch = 0 : i64, scratch_operands = 0 : i64, tpu.core_type = #tpu.core_type<tc>, window_params = [{transform_indices = @transform_0, window_bounds = array<i64: 24, 128>}, {pipeline_mode = #tpu.pipeline_mode<synchronous>, transform_indices = @transform_1, window_bounds = array<i64: 128, 384>}, {pipeline_mode = #tpu.pipeline_mode<synchronous>, transform_indices = @transform_2, window_bounds = array<i64: 1, 384>}, {transform_indices = @transform_3, window_bounds = array<i64: 24, 384>}]} {
    %c0 = arith.constant 0 : index
    %c0_0 = arith.constant 0 : index
    %0 = vector.load %arg1[%c0, %c0_0] : memref<24x128xf32, #tpu.memory_space<vmem>>, vector<24x128xf32>
    %c0_1 = arith.constant 0 : index
    %c0_2 = arith.constant 0 : index
    %1 = vector.load %arg2[%c0_1, %c0_2] : memref<128x384xf32, #tpu.memory_space<vmem>>, vector<128x384xf32>
    %cst = arith.constant dense<0.000000e+00> : vector<24x384xf32>
    %2 = tpu.matmul %0, %1, %cst {dimension_numbers = #tpu.dot_dimension_numbers<[1], [0], [0], [1], [0, 0, 1, 1], [], []>} : vector<24x128xf32>, vector<128x384xf32>, vector<24x384xf32> -> vector<24x384xf32>
    %c0_3 = arith.constant 0 : index
    %c0_4 = arith.constant 0 : index
    %3 = vector.load %arg3[%c0_3, %c0_4] : memref<1x384xf32, #tpu.memory_space<vmem>>, vector<1x384xf32>
    %4 = vector.broadcast %3 : vector<1x384xf32> to vector<24x384xf32>
    %5 = arith.addf %2, %4 : vector<24x384xf32>
    %c0_5 = arith.constant 0 : index
    %c0_6 = arith.constant 0 : index
    %6 = vector.load %arg4[%c0_5, %c0_6] : memref<24x384xf32, #tpu.memory_space<vmem>>, vector<24x384xf32>
    tpu.vector_store %arg4[%c0_5, %c0_6], %5 {strides = array<i32>} : memref<24x384xf32, #tpu.memory_space<vmem>>, vector<24x384xf32>,
    return
  }
  func.func @transform_0(%arg0: i32) -> (i32, i32) {
    %c0_i32 = arith.constant 0 : i32
    %c0_i32_0 = arith.constant 0 : i32
    return %arg0, %c0_i32 : i32, i32
  }
  func.func @transform_1(%arg0: i32) -> (i32, i32) {
    %c0_i32 = arith.constant 0 : i32
    %c0_i32_0 = arith.constant 0 : i32
    %c0_i32_1 = arith.constant 0 : i32
    return %c0_i32, %c0_i32_0 : i32, i32
  }
  func.func @transform_2(%arg0: i32) -> (i32, i32) {
    %c0_i32 = arith.constant 0 : i32
    %c0_i32_0 = arith.constant 0 : i32
    %c0_i32_1 = arith.constant 0 : i32
    return %c0_i32, %c0_i32_0 : i32, i32
  }
  func.func @transform_3(%arg0: i32) -> (i32, i32) {
    %c0_i32 = arith.constant 0 : i32
    %c0_i32_0 = arith.constant 0 : i32
    return %arg0, %c0_i32 : i32, i32
  }
}

module attributes {stable_mosaic.version = 11 : i64} {
  func.func @_att_score_kernel(%arg0: i32, %arg1: memref<40x128xf32, #tpu.memory_space<vmem>>, %arg2: memref<40x128xf32, #tpu.memory_space<vmem>>, %arg3: memref<128x128xf32, #tpu.memory_space<vmem>>, %arg4: memref<40x128xf32, #tpu.memory_space<vmem>>) attributes {dimension_semantics = [#tpu.dimension_semantics<parallel>], iteration_bounds = array<i64: 1>, scalar_prefetch = 0 : i64, scratch_operands = 0 : i64, tpu.core_type = #tpu.core_type<tc>, window_params = [{transform_indices = @transform_0, window_bounds = array<i64: 40, 128>}, {transform_indices = @transform_1, window_bounds = array<i64: 40, 128>}, {pipeline_mode = #tpu.pipeline_mode<synchronous>, transform_indices = @transform_2, window_bounds = array<i64: 128, 128>}, {transform_indices = @transform_3, window_bounds = array<i64: 40, 128>}]} {
    %c0 = arith.constant 0 : index
    %c0_0 = arith.constant 0 : index
    %0 = vector.load %arg1[%c0, %c0_0] : memref<40x128xf32, #tpu.memory_space<vmem>>, vector<40x128xf32>
    %c0_1 = arith.constant 0 : index
    %c0_2 = arith.constant 0 : index
    %1 = vector.load %arg2[%c0_1, %c0_2] : memref<40x128xf32, #tpu.memory_space<vmem>>, vector<40x128xf32>
    %2 = arith.mulf %0, %1 : vector<40x128xf32>
    %c0_3 = arith.constant 0 : index
    %c0_4 = arith.constant 0 : index
    %3 = vector.load %arg3[%c0_3, %c0_4] : memref<128x128xf32, #tpu.memory_space<vmem>>, vector<128x128xf32>
    %cst = arith.constant dense<0.000000e+00> : vector<40x128xf32>
    %4 = tpu.matmul %2, %3, %cst {dimension_numbers = #tpu.dot_dimension_numbers<[1], [0], [0], [1], [0, 0, 1, 1], [], []>} : vector<40x128xf32>, vector<128x128xf32>, vector<40x128xf32> -> vector<40x128xf32>
    %cst_5 = arith.constant 0.000000e+00 : f32
    %5 = vector.broadcast %cst_5 : f32 to vector<40x128xf32>
    %6 = arith.cmpf ogt, %4, %5 : vector<40x128xf32>
    %cst_6 = arith.constant 2.000000e-01 : f32
    %7 = vector.broadcast %cst_6 : f32 to vector<40x128xf32>
    %8 = arith.mulf %7, %4 : vector<40x128xf32>
    %9 = arith.select %6, %4, %8 : vector<40x128xi1>, vector<40x128xf32>
    %10 = math.exp %9 : vector<40x128xf32>
    %c0_7 = arith.constant 0 : index
    %c0_8 = arith.constant 0 : index
    %11 = vector.load %arg4[%c0_7, %c0_8] : memref<40x128xf32, #tpu.memory_space<vmem>>, vector<40x128xf32>
    tpu.vector_store %arg4[%c0_7, %c0_8], %10 {strides = array<i32>} : memref<40x128xf32, #tpu.memory_space<vmem>>, vector<40x128xf32>,
    return
  }
  func.func @transform_0(%arg0: i32) -> (i32, i32) {
    %c0_i32 = arith.constant 0 : i32
    %c0_i32_0 = arith.constant 0 : i32
    return %arg0, %c0_i32 : i32, i32
  }
  func.func @transform_1(%arg0: i32) -> (i32, i32) {
    %c0_i32 = arith.constant 0 : i32
    %c0_i32_0 = arith.constant 0 : i32
    return %arg0, %c0_i32 : i32, i32
  }
  func.func @transform_2(%arg0: i32) -> (i32, i32) {
    %c0_i32 = arith.constant 0 : i32
    %c0_i32_0 = arith.constant 0 : i32
    %c0_i32_1 = arith.constant 0 : i32
    return %c0_i32, %c0_i32_0 : i32, i32
  }
  func.func @transform_3(%arg0: i32) -> (i32, i32) {
    %c0_i32 = arith.constant 0 : i32
    %c0_i32_0 = arith.constant 0 : i32
    return %arg0, %c0_i32 : i32, i32
  }
}

module attributes {stable_mosaic.version = 11 : i64} {
  func.func @_residual_kernel(%arg0: i32, %arg1: memref<24x128xf32, #tpu.memory_space<vmem>>, %arg2: memref<24x128xf32, #tpu.memory_space<vmem>>, %arg3: memref<128x128xf32, #tpu.memory_space<vmem>>, %arg4: memref<1x128xf32, #tpu.memory_space<vmem>>, %arg5: memref<128x128xf32, #tpu.memory_space<vmem>>, %arg6: memref<1x128xf32, #tpu.memory_space<vmem>>, %arg7: memref<24x128xf32, #tpu.memory_space<vmem>>) attributes {dimension_semantics = [#tpu.dimension_semantics<parallel>], iteration_bounds = array<i64: 1>, scalar_prefetch = 0 : i64, scratch_operands = 0 : i64, tpu.core_type = #tpu.core_type<tc>, window_params = [{transform_indices = @transform_0, window_bounds = array<i64: 24, 128>}, {transform_indices = @transform_1, window_bounds = array<i64: 24, 128>}, {pipeline_mode = #tpu.pipeline_mode<synchronous>, transform_indices = @transform_2, window_bounds = array<i64: 128, 128>}, {pipeline_mode = #tpu.pipeline_mode<synchronous>, transform_indices = @transform_3, window_bounds = array<i64: 1, 128>}, {pipeline_mode = #tpu.pipeline_mode<synchronous>, transform_indices = @transform_4, window_bounds = array<i64: 128, 128>}, {pipeline_mode = #tpu.pipeline_mode<synchronous>, transform_indices = @transform_5, window_bounds = array<i64: 1, 128>}, {transform_indices = @transform_6, window_bounds = array<i64: 24, 128>}]} {
    %c0 = arith.constant 0 : index
    %c0_0 = arith.constant 0 : index
    %0 = vector.load %arg2[%c0, %c0_0] : memref<24x128xf32, #tpu.memory_space<vmem>>, vector<24x128xf32>
    %c0_1 = arith.constant 0 : index
    %c0_2 = arith.constant 0 : index
    %1 = vector.load %arg3[%c0_1, %c0_2] : memref<128x128xf32, #tpu.memory_space<vmem>>, vector<128x128xf32>
    %cst = arith.constant dense<0.000000e+00> : vector<24x128xf32>
    %2 = tpu.matmul %0, %1, %cst {dimension_numbers = #tpu.dot_dimension_numbers<[1], [0], [0], [1], [0, 0, 1, 1], [], []>} : vector<24x128xf32>, vector<128x128xf32>, vector<24x128xf32> -> vector<24x128xf32>
    %c0_3 = arith.constant 0 : index
    %c0_4 = arith.constant 0 : index
    %3 = vector.load %arg4[%c0_3, %c0_4] : memref<1x128xf32, #tpu.memory_space<vmem>>, vector<1x128xf32>
    %4 = vector.broadcast %3 : vector<1x128xf32> to vector<24x128xf32>
    %5 = arith.addf %2, %4 : vector<24x128xf32>
    %cst_5 = arith.constant 0.000000e+00 : f32
    %6 = vector.broadcast %cst_5 : f32 to vector<24x128xf32>
    %7 = arith.maximumf %5, %6 : vector<24x128xf32>
    %c0_6 = arith.constant 0 : index
    %c0_7 = arith.constant 0 : index
    %8 = vector.load %arg5[%c0_6, %c0_7] : memref<128x128xf32, #tpu.memory_space<vmem>>, vector<128x128xf32>
    %cst_8 = arith.constant dense<0.000000e+00> : vector<24x128xf32>
    %9 = tpu.matmul %7, %8, %cst_8 {dimension_numbers = #tpu.dot_dimension_numbers<[1], [0], [0], [1], [0, 0, 1, 1], [], []>} : vector<24x128xf32>, vector<128x128xf32>, vector<24x128xf32> -> vector<24x128xf32>
    %c0_9 = arith.constant 0 : index
    %c0_10 = arith.constant 0 : index
    %10 = vector.load %arg6[%c0_9, %c0_10] : memref<1x128xf32, #tpu.memory_space<vmem>>, vector<1x128xf32>
    %11 = vector.broadcast %10 : vector<1x128xf32> to vector<24x128xf32>
    %12 = arith.addf %9, %11 : vector<24x128xf32>
    %cst_11 = arith.constant 0.000000e+00 : f32
    %13 = vector.broadcast %cst_11 : f32 to vector<24x128xf32>
    %14 = arith.maximumf %12, %13 : vector<24x128xf32>
    %c0_12 = arith.constant 0 : index
    %c0_13 = arith.constant 0 : index
    %15 = vector.load %arg1[%c0_12, %c0_13] : memref<24x128xf32, #tpu.memory_space<vmem>>, vector<24x128xf32>
    %16 = arith.addf %15, %14 : vector<24x128xf32>
    %c0_14 = arith.constant 0 : index
    %c0_15 = arith.constant 0 : index
    %17 = vector.load %arg7[%c0_14, %c0_15] : memref<24x128xf32, #tpu.memory_space<vmem>>, vector<24x128xf32>
    tpu.vector_store %arg7[%c0_14, %c0_15], %16 {strides = array<i32>} : memref<24x128xf32, #tpu.memory_space<vmem>>, vector<24x128xf32>,
    return
  }
  func.func @transform_0(%arg0: i32) -> (i32, i32) {
    %c0_i32 = arith.constant 0 : i32
    %c0_i32_0 = arith.constant 0 : i32
    return %arg0, %c0_i32 : i32, i32
  }
  func.func @transform_1(%arg0: i32) -> (i32, i32) {
    %c0_i32 = arith.constant 0 : i32
    %c0_i32_0 = arith.constant 0 : i32
    return %arg0, %c0_i32 : i32, i32
  }
  func.func @transform_2(%arg0: i32) -> (i32, i32) {
    %c0_i32 = arith.constant 0 : i32
    %c0_i32_0 = arith.constant 0 : i32
    %c0_i32_1 = arith.constant 0 : i32
    return %c0_i32, %c0_i32_0 : i32, i32
  }
  func.func @transform_3(%arg0: i32) -> (i32, i32) {
    %c0_i32 = arith.constant 0 : i32
    %c0_i32_0 = arith.constant 0 : i32
    %c0_i32_1 = arith.constant 0 : i32
    return %c0_i32, %c0_i32_0 : i32, i32
  }
  func.func @transform_4(%arg0: i32) -> (i32, i32) {
    %c0_i32 = arith.constant 0 : i32
    %c0_i32_0 = arith.constant 0 : i32
    %c0_i32_1 = arith.constant 0 : i32
    return %c0_i32, %c0_i32_0 : i32, i32
  }
  func.func @transform_5(%arg0: i32) -> (i32, i32) {
    %c0_i32 = arith.constant 0 : i32
    %c0_i32_0 = arith.constant 0 : i32
    %c0_i32_1 = arith.constant 0 : i32
    return %c0_i32, %c0_i32_0 : i32, i32
  }
  func.func @transform_6(%arg0: i32) -> (i32, i32) {
    %c0_i32 = arith.constant 0 : i32
    %c0_i32_0 = arith.constant 0 : i32
    return %arg0, %c0_i32 : i32, i32
  }
}

module attributes {stable_mosaic.version = 11 : i64} {
  func.func @_att_apply_kernel(%arg0: i32, %arg1: memref<40x128xf32, #tpu.memory_space<vmem>>, %arg2: memref<40x128xf32, #tpu.memory_space<vmem>>, %arg3: memref<40x128xf32, #tpu.memory_space<vmem>>, %arg4: memref<40x128xf32, #tpu.memory_space<vmem>>) attributes {dimension_semantics = [#tpu.dimension_semantics<parallel>], iteration_bounds = array<i64: 1>, scalar_prefetch = 0 : i64, scratch_operands = 0 : i64, tpu.core_type = #tpu.core_type<tc>, window_params = [{transform_indices = @transform_0, window_bounds = array<i64: 40, 128>}, {transform_indices = @transform_1, window_bounds = array<i64: 40, 128>}, {transform_indices = @transform_2, window_bounds = array<i64: 40, 128>}, {transform_indices = @transform_3, window_bounds = array<i64: 40, 128>}]} {
    %c0 = arith.constant 0 : index
    %c0_0 = arith.constant 0 : index
    %0 = vector.load %arg1[%c0, %c0_0] : memref<40x128xf32, #tpu.memory_space<vmem>>, vector<40x128xf32>
    %c0_1 = arith.constant 0 : index
    %c0_2 = arith.constant 0 : index
    %1 = vector.load %arg2[%c0_1, %c0_2] : memref<40x128xf32, #tpu.memory_space<vmem>>, vector<40x128xf32>
    %2 = arith.mulf %0, %1 : vector<40x128xf32>
    %c0_3 = arith.constant 0 : index
    %c0_4 = arith.constant 0 : index
    %3 = vector.load %arg3[%c0_3, %c0_4] : memref<40x128xf32, #tpu.memory_space<vmem>>, vector<40x128xf32>
    %4 = tpu.reciprocal %3 {approx = true} : vector<40x128xf32> -> vector<40x128xf32>
    %5 = arith.mulf %2, %4 : vector<40x128xf32>
    %c0_5 = arith.constant 0 : index
    %c0_6 = arith.constant 0 : index
    %6 = vector.load %arg4[%c0_5, %c0_6] : memref<40x128xf32, #tpu.memory_space<vmem>>, vector<40x128xf32>
    tpu.vector_store %arg4[%c0_5, %c0_6], %5 {strides = array<i32>} : memref<40x128xf32, #tpu.memory_space<vmem>>, vector<40x128xf32>,
    return
  }
  func.func @transform_0(%arg0: i32) -> (i32, i32) {
    %c0_i32 = arith.constant 0 : i32
    %c0_i32_0 = arith.constant 0 : i32
    return %arg0, %c0_i32 : i32, i32
  }
  func.func @transform_1(%arg0: i32) -> (i32, i32) {
    %c0_i32 = arith.constant 0 : i32
    %c0_i32_0 = arith.constant 0 : i32
    return %arg0, %c0_i32 : i32, i32
  }
  func.func @transform_2(%arg0: i32) -> (i32, i32) {
    %c0_i32 = arith.constant 0 : i32
    %c0_i32_0 = arith.constant 0 : i32
    return %arg0, %c0_i32 : i32, i32
  }
  func.func @transform_3(%arg0: i32) -> (i32, i32) {
    %c0_i32 = arith.constant 0 : i32
    %c0_i32_0 = arith.constant 0 : i32
    return %arg0, %c0_i32 : i32, i32
  }
}

module attributes {stable_mosaic.version = 11 : i64} {
  func.func @_linear_kernel(%arg0: i32, %arg1: memref<16x256xf32, #tpu.memory_space<vmem>>, %arg2: memref<256x128xf32, #tpu.memory_space<vmem>>, %arg3: memref<1x128xf32, #tpu.memory_space<vmem>>, %arg4: memref<16x128xf32, #tpu.memory_space<vmem>>) attributes {dimension_semantics = [#tpu.dimension_semantics<parallel>], iteration_bounds = array<i64: 1>, scalar_prefetch = 0 : i64, scratch_operands = 0 : i64, tpu.core_type = #tpu.core_type<tc>, window_params = [{transform_indices = @transform_0, window_bounds = array<i64: 16, 256>}, {pipeline_mode = #tpu.pipeline_mode<synchronous>, transform_indices = @transform_1, window_bounds = array<i64: 256, 128>}, {pipeline_mode = #tpu.pipeline_mode<synchronous>, transform_indices = @transform_2, window_bounds = array<i64: 1, 128>}, {transform_indices = @transform_3, window_bounds = array<i64: 16, 128>}]} {
    %c0 = arith.constant 0 : index
    %c0_0 = arith.constant 0 : index
    %0 = vector.load %arg1[%c0, %c0_0] : memref<16x256xf32, #tpu.memory_space<vmem>>, vector<16x256xf32>
    %c0_1 = arith.constant 0 : index
    %c0_2 = arith.constant 0 : index
    %1 = vector.load %arg2[%c0_1, %c0_2] : memref<256x128xf32, #tpu.memory_space<vmem>>, vector<256x128xf32>
    %cst = arith.constant dense<0.000000e+00> : vector<16x128xf32>
    %2 = tpu.matmul %0, %1, %cst {dimension_numbers = #tpu.dot_dimension_numbers<[1], [0], [0], [1], [0, 0, 1, 1], [], []>} : vector<16x256xf32>, vector<256x128xf32>, vector<16x128xf32> -> vector<16x128xf32>
    %c0_3 = arith.constant 0 : index
    %c0_4 = arith.constant 0 : index
    %3 = vector.load %arg3[%c0_3, %c0_4] : memref<1x128xf32, #tpu.memory_space<vmem>>, vector<1x128xf32>
    %4 = vector.broadcast %3 : vector<1x128xf32> to vector<16x128xf32>
    %5 = arith.addf %2, %4 : vector<16x128xf32>
    %cst_5 = arith.constant 0.000000e+00 : f32
    %6 = vector.broadcast %cst_5 : f32 to vector<16x128xf32>
    %7 = arith.maximumf %5, %6 : vector<16x128xf32>
    %c0_6 = arith.constant 0 : index
    %c0_7 = arith.constant 0 : index
    %8 = vector.load %arg4[%c0_6, %c0_7] : memref<16x128xf32, #tpu.memory_space<vmem>>, vector<16x128xf32>
    tpu.vector_store %arg4[%c0_6, %c0_7], %7 {strides = array<i32>} : memref<16x128xf32, #tpu.memory_space<vmem>>, vector<16x128xf32>,
    return
  }
  func.func @transform_0(%arg0: i32) -> (i32, i32) {
    %c0_i32 = arith.constant 0 : i32
    %c0_i32_0 = arith.constant 0 : i32
    return %arg0, %c0_i32 : i32, i32
  }
  func.func @transform_1(%arg0: i32) -> (i32, i32) {
    %c0_i32 = arith.constant 0 : i32
    %c0_i32_0 = arith.constant 0 : i32
    %c0_i32_1 = arith.constant 0 : i32
    return %c0_i32, %c0_i32_0 : i32, i32
  }
  func.func @transform_2(%arg0: i32) -> (i32, i32) {
    %c0_i32 = arith.constant 0 : i32
    %c0_i32_0 = arith.constant 0 : i32
    %c0_i32_1 = arith.constant 0 : i32
    return %c0_i32, %c0_i32_0 : i32, i32
  }
  func.func @transform_3(%arg0: i32) -> (i32, i32) {
    %c0_i32 = arith.constant 0 : i32
    %c0_i32_0 = arith.constant 0 : i32
    return %arg0, %c0_i32 : i32, i32
  }
}

</mosaic_0001>

<bundles_post_ra>
// kernel: dmpnn_forward.10
= control target key start
LH: loop header
LB: loop body
LE: loop exit
PB: predicated region body
PF: predicated region fallthrough
CT: control target
= control target key end

     0   :  { %8 = vsyncpa [#allocation3], 0  ;;  %s197_s15 = smov [#allocation2]   ;;  %s198_s17 = smov 128   ;;  %s253_s0 = inlined_call_operand.vmem [shape: f32[24,256], index: 0, kind: input, shape index: {}]   ;;  %s254_s1 = inlined_call_operand.hbm [shape: f32[256,128], index: 1, kind: input, shape index: {}]   ;;  %s255_s2 = inlined_call_operand.vmem [shape: f32[1,128], index: 2, kind: input, shape index: {}]   ;;  %s256_s3 = inlined_call_operand.vmem [shape: f32[24,128], index: 3, kind: output, shape index: {}]  }
   0x1   :  { %s15_s14 = sshll.u32 %s254_s1, 4  ;;  %s17_s16 = sshll.u32 %s197_s15, 4  ;;  %s16_s14 = int_to_ptr.hbm [resolvable:$true] %s15_s14  ;;  %s18_s16 = int_to_ptr.vmem [resolvable:$true] %s17_s16 }
   0x2   :  { %s199_s18 = smov 8  }
   0x3   :  { %23 = dma.hbm_to_vmem [thread:$0]  %s16_s14, 4096, %s18_s16, [#allocation3], %s198_s17, %s198_s17, %s199_s18  }
   0x4   :  { %195 = dma.done.wait [#allocation3], 4096  }
   0x5   :  { %196 = vsyncadd [#allocation3], 4294963200  ;;  %v51_v0 = vld [vmem:[#allocation2 + $0x78] sm:$0xff]  ;;  %v50_v1 = vld [vmem:[#allocation2 + $0x70] sm:$0xff] }
   0x6   :  { %v67_v2 = vld [vmem:[#allocation2 + $0xf8] sm:$0xff]  ;;  %135 = vmatpush.msra.mxu2 %v51_v0  ;;  %v66_v3 = vld [vmem:[#allocation2 + $0xf0] sm:$0xff]  ;;  %v49_v4 = vld [vmem:[#allocation2 + $0x68] sm:$0xff]  ;;  %72 = vmatpush.msra.mxu0 %v51_v0 }
   0x7   :  { %151 = vmatpush.msra.mxu3 %v67_v2  ;;  %v65_v5 = vld [vmem:[#allocation2 + $0xe8] sm:$0xff]  ;;  %98 = vmatpush.msra.mxu1 %v67_v2  ;;  %v48_v6 = vld [vmem:[#allocation2 + $0x60] sm:$0xff]  ;;  %v47_v8 = vld [vmem:[#allocation2 + $0x58] sm:$0xff] }
   0x8   :  { %136 = vmatpush.msra.mxu2 %v50_v1  ;;  %v64_v7 = vld [vmem:[#allocation2 + $0xe0] sm:$0xff]  ;;  %73 = vmatpush.msra.mxu0 %v50_v1  ;;  %v63_v9 = vld [vmem:[#allocation2 + $0xd8] sm:$0xff]  ;;  %v46_v10 = vld [vmem:[#allocation2 + $0x50] sm:$0xff] }
   0x9   :  { %152 = vmatpush.msra.mxu3 %v66_v3  ;;  %99 = vmatpush.msra.mxu1 %v66_v3  ;;  %v62_v11 = vld [vmem:[#allocation2 + $0xd0] sm:$0xff]  ;;  %v45_v12 = vld [vmem:[#allocation2 + $0x48] sm:$0xff]  ;;  %v44_v14 = vld [vmem:[#allocation2 + $0x40] sm:$0xff] }
   0xa   :  { %137 = vmatpush.msra.mxu2 %v49_v4  ;;  %74 = vmatpush.msra.mxu0 %v49_v4  ;;  %v61_v13 = vld [vmem:[#allocation2 + $0xc8] sm:$0xff]  ;;  %v60_v15 = vld [vmem:[#allocation2 + $0xc0] sm:$0xff]  ;;  %v43_v16 = vld [vmem:[#allocation2 + $0x38] sm:$0xff] }
   0xb   :  { %153 = vmatpush.msra.mxu3 %v65_v5  ;;  %100 = vmatpush.msra.mxu1 %v65_v5  ;;  %v59_v17 = vld [vmem:[#allocation2 + $0xb8] sm:$0xff]  ;;  %v42_v18 = vld [vmem:[#allocation2 + $0x30] sm:$0xff]  ;;  %v41_v20 = vld [vmem:[#allocation2 + $0x28] sm:$0xff] }
   0xc   :  { %138 = vmatpush.msra.mxu2 %v48_v6  ;;  %75 = vmatpush.msra.mxu0 %v48_v6  ;;  %v58_v19 = vld [vmem:[#allocation2 + $0xb0] sm:$0xff]  ;;  %v57_v21 = vld [vmem:[#allocation2 + $0xa8] sm:$0xff]  ;;  %v40_v22 = vld [vmem:[#allocation2 + $0x20] sm:$0xff] }
   0xd   :  { %154 = vmatpush.msra.mxu3 %v64_v7  ;;  %101 = vmatpush.msra.mxu1 %v64_v7  ;;  %v56_v23 = vld [vmem:[#allocation2 + $0xa0] sm:$0xff]  ;;  %v39_v24 = vld [vmem:[#allocation2 + $0x18] sm:$0xff]  ;;  %v38_v26 = vld [vmem:[#allocation2 + $0x10] sm:$0xff] }
   0xe   :  { %139 = vmatpush.msra.mxu2 %v47_v8  ;;  %76 = vmatpush.msra.mxu0 %v47_v8  ;;  %v55_v25 = vld [vmem:[#allocation2 + $0x98] sm:$0xff]  ;;  %v54_v27 = vld [vmem:[#allocation2 + $0x90] sm:$0xff]  ;;  %v37_v28 = vld [vmem:[#allocation2 + $0x8] sm:$0xff] }
   0xf   :  { %155 = vmatpush.msra.mxu3 %v63_v9  ;;  %102 = vmatpush.msra.mxu1 %v63_v9  ;;  %v53_v29 = vld [vmem:[#allocation2 + $0x88] sm:$0xff]  ;;  %v36_v30 = vld [vmem:[#allocation2] sm:$0xff]  ;;  %v32_v32 = vld [vmem:[%s253_s0 + $0x10] sm:$0xff] }
  0x10   :  { %140 = vmatpush.msra.mxu2 %v46_v10  ;;  %77 = vmatpush.msra.mxu0 %v46_v10  ;;  %v52_v31 = vld [vmem:[#allocation2 + $0x80] sm:$0xff]  ;;  %v33_v33 = vld [vmem:[%s253_s0 + $0x18] sm:$0xff]  ;;  %v31_v35 = vld [vmem:[%s253_s0 + $0x8] sm:$0xff] }
  0x11   :  { %156 = vmatpush.msra.mxu3 %v62_v11  ;;  %103 = vmatpush.msra.mxu1 %v62_v11  ;;  %v30_v34 = vld [vmem:[%s253_s0] sm:$0xff]  ;;  %v35_v37 = vld [vmem:[%s253_s0 + $0x28] sm:$0xff] }
  0x12   :  { %141 = vmatpush.msra.mxu2 %v45_v12  ;;  %78 = vmatpush.msra.mxu0 %v45_v12  ;;  %v34_v36 = vld [vmem:[%s253_s0 + $0x20] sm:$0xff] }
  0x13   :  { %157 = vmatpush.msra.mxu3 %v61_v13  ;;  %104 = vmatpush.msra.mxu1 %v61_v13  ;;  %v170_v38 = vld [vmem:[%s255_s2] ss:$0 sm:$0xff] }
  0x14   :  { %142 = vmatpush.msra.mxu2 %v44_v14  ;;  %79 = vmatpush.msra.mxu0 %v44_v14 }
  0x15   :  { %158 = vmatpush.msra.mxu3 %v60_v15  ;;  %105 = vmatpush.msra.mxu1 %v60_v15 }
  0x16   :  { %143 = vmatpush.msra.mxu2 %v43_v16  ;;  %80 = vmatpush.msra.mxu0 %v43_v16 }
  0x17   :  { %159 = vmatpush.msra.mxu3 %v59_v17  ;;  %106 = vmatpush.msra.mxu1 %v59_v17 }
  0x18   :  { %144 = vmatpush.msra.mxu2 %v42_v18  ;;  %81 = vmatpush.msra.mxu0 %v42_v18 }
  0x19   :  { %160 = vmatpush.msra.mxu3 %v58_v19  ;;  %107 = vmatpush.msra.mxu1 %v58_v19 }
  0x1a   :  { %145 = vmatpush.msra.mxu2 %v41_v20  ;;  %82 = vmatpush.msra.mxu0 %v41_v20 }
  0x1b   :  { %161 = vmatpush.msra.mxu3 %v57_v21  ;;  %108 = vmatpush.msra.mxu1 %v57_v21 }
  0x1c   :  { %146 = vmatpush.msra.mxu2 %v40_v22  ;;  %83 = vmatpush.msra.mxu0 %v40_v22 }
  0x1d   :  { %162 = vmatpush.msra.mxu3 %v56_v23  ;;  %109 = vmatpush.msra.mxu1 %v56_v23 }
  0x1e   :  { %147 = vmatpush.msra.mxu2 %v39_v24  ;;  %84 = vmatpush.msra.mxu0 %v39_v24 }
  0x1f   :  { %163 = vmatpush.msra.mxu3 %v55_v25  ;;  %110 = vmatpush.msra.mxu1 %v55_v25 }
  0x20   :  { %148 = vmatpush.msra.mxu2 %v38_v26  ;;  %85 = vmatpush.msra.mxu0 %v38_v26 }
  0x21   :  { %164 = vmatpush.msra.mxu3 %v54_v27  ;;  %111 = vmatpush.msra.mxu1 %v54_v27 }
  0x22   :  { %149 = vmatpush.msra.mxu2 %v37_v28  ;;  %86 = vmatpush.msra.mxu0 %v37_v28 }
  0x23   :  { %165 = vmatpush.msra.mxu3 %v53_v29  ;;  %112 = vmatpush.msra.mxu1 %v53_v29 }
  0x24   :  { %150 = vmatpush.msra.mxu2 %v36_v30  ;;  %87 = vmatpush.msra.mxu0 %v36_v30 }
  0x25   :  { %166 = vmatpush.msra.mxu3 %v52_v31  ;;  %91 = vmatmul.f32.vlgmr.msra.gmra.mxu2 %v32_v32 }
  0x26   :  { %117 = vmatmul.f32.vlgmr.msra.gmra.mxu3 %v33_v33  ;;  %113 = vmatpush.msra.mxu1 %v52_v31 }
  0x27   :  { %88 = vmatmul.f32.vlgmr.msra.gmra.mxu0 %v30_v34  ;;  %114 = vmatmul.f32.vlgmr.msra.gmra.mxu1 %v31_v35 }
  0x2d   :  { %94 = vmatmul.f32.gmra.mxu2 %v34_v36 }
  0x2e   :  { %120 = vmatmul.f32.gmra.mxu3 %v35_v37 }
  0xa4   :  { %v89_v39 = vpop.f32.mrf.mxu0  ;;  %v115_v40 = vpop.f32.mrf.mxu1 }
  0xa5   :  { %v90_v41 = vadd.f32 %v170_v38, %v89_v39 }
  0xa7   :  { %v116_v42 = vadd.f32 %v115_v40, %v90_v41 }
  0xa8   :  { %v92_v43 = vpop.f32.mrf.mxu2 }
  0xa9   :  { %v118_v44 = vpop.f32.mrf.mxu3  ;;  %v93_v45 = vadd.f32 %v170_v38, %v92_v43  ;;  %v124_v46 = vmax.f32 %v116_v42, 0.0 }
  0xab   :  { %v119_v47 = vadd.f32 %v118_v44, %v93_v45  ;;  %127 = vst [vmem:[%s256_s3] sm:$0xff] %v124_v46 }
  0xad   :  { %v125_v48 = vmax.f32 %v119_v47, 0.0 }
  0xaf   :  { %128 = vst [vmem:[%s256_s3 + $0x8] sm:$0xff] %v125_v48 }
  0xb0   :  { %v95_v49 = vpop.f32.mrf.mxu2 }
  0xb1   :  { %v121_v50 = vpop.f32.mrf.mxu3  ;;  %v96_v51 = vadd.f32 %v170_v38, %v95_v49 }
  0xb3   :  { %v122_v52 = vadd.f32 %v121_v50, %v96_v51 }
  0xb5   :  { %v126_v53 = vmax.f32 %v122_v52, 0.0 }
  0xb7   :  { %129 = vst [vmem:[%s256_s3 + $0x10] sm:$0xff] %v126_v53 }
  0xb8   :  { %134 = vsyncpa [#allocation3], 1 }

// kernel: dmpnn_forward.11
= control target key start
LH: loop header
LB: loop body
LE: loop exit
PB: predicated region body
PF: predicated region fallthrough
CT: control target
= control target key end

     0   :  { %s383_s1 = inlined_call_operand.vmem [shape: f32[128,384], index: 1, kind: input, shape index: {}]   ;;  %s384_s0 = inlined_call_operand.vmem [shape: f32[24,128], index: 0, kind: input, shape index: {}]   ;;  %s385_s2 = inlined_call_operand.vmem [shape: f32[1,384], index: 2, kind: input, shape index: {}]   ;;  %s386_s3 = inlined_call_operand.vmem [shape: f32[24,384], index: 3, kind: output, shape index: {}]  }
   0x1   :  { %v64_v0 = vld [vmem:[%s383_s1 + $0x178] sm:$0xff]  ;;  %v61_v1 = vld [vmem:[%s383_s1 + $0x160] sm:$0xff]  ;;  %v63_v2 = vld [vmem:[%s383_s1 + $0x170] sm:$0xff] }
   0x2   :  { %125 = vmatpush.msra.mxu2 %v64_v0  ;;  %v62_v3 = vld [vmem:[%s383_s1 + $0x168] sm:$0xff]  ;;  %99 = vmatpush.msra.mxu1 %v63_v2  ;;  %v60_v5 = vld [vmem:[%s383_s1 + $0x158] sm:$0xff]  ;;  %v59_v6 = vld [vmem:[%s383_s1 + $0x150] sm:$0xff] }
   0x3   :  { %v58_v4 = vld [vmem:[%s383_s1 + $0x148] sm:$0xff]  ;;  %164 = vmatpush.msra.mxu3 %v62_v3  ;;  %v57_v7 = vld [vmem:[%s383_s1 + $0x140] sm:$0xff]  ;;  %v56_v8 = vld [vmem:[%s383_s1 + $0x138] sm:$0xff]  ;;  %73 = vmatpush.msra.mxu0 %v62_v3 }
   0x4   :  { %126 = vmatpush.msra.mxu2 %v61_v1  ;;  %v55_v9 = vld [vmem:[%s383_s1 + $0x130] sm:$0xff]  ;;  %100 = vmatpush.msra.mxu1 %v60_v5  ;;  %v54_v10 = vld [vmem:[%s383_s1 + $0x128] sm:$0xff]  ;;  %v53_v11 = vld [vmem:[%s383_s1 + $0x120] sm:$0xff] }
   0x5   :  { %165 = vmatpush.msra.mxu3 %v59_v6  ;;  %74 = vmatpush.msra.mxu0 %v59_v6  ;;  %v52_v12 = vld [vmem:[%s383_s1 + $0x118] sm:$0xff]  ;;  %v51_v13 = vld [vmem:[%s383_s1 + $0x110] sm:$0xff]  ;;  %v50_v14 = vld [vmem:[%s383_s1 + $0x108] sm:$0xff] }
   0x6   :  { %127 = vmatpush.msra.mxu2 %v58_v4  ;;  %101 = vmatpush.msra.mxu1 %v57_v7  ;;  %v49_v15 = vld [vmem:[%s383_s1 + $0x100] sm:$0xff]  ;;  %v48_v16 = vld [vmem:[%s383_s1 + $0xf8] sm:$0xff]  ;;  %v47_v17 = vld [vmem:[%s383_s1 + $0xf0] sm:$0xff] }
   0x7   :  { %166 = vmatpush.msra.mxu3 %v56_v8  ;;  %75 = vmatpush.msra.mxu0 %v56_v8  ;;  %v46_v18 = vld [vmem:[%s383_s1 + $0xe8] sm:$0xff]  ;;  %v45_v19 = vld [vmem:[%s383_s1 + $0xe0] sm:$0xff]  ;;  %v44_v20 = vld [vmem:[%s383_s1 + $0xd8] sm:$0xff] }
   0x8   :  { %128 = vmatpush.msra.mxu2 %v55_v9  ;;  %102 = vmatpush.msra.mxu1 %v54_v10  ;;  %v43_v21 = vld [vmem:[%s383_s1 + $0xd0] sm:$0xff]  ;;  %v42_v22 = vld [vmem:[%s383_s1 + $0xc8] sm:$0xff]  ;;  %v41_v23 = vld [vmem:[%s383_s1 + $0xc0] sm:$0xff] }
   0x9   :  { %167 = vmatpush.msra.mxu3 %v53_v11  ;;  %76 = vmatpush.msra.mxu0 %v53_v11  ;;  %v40_v24 = vld [vmem:[%s383_s1 + $0xb8] sm:$0xff]  ;;  %v39_v25 = vld [vmem:[%s383_s1 + $0xb0] sm:$0xff]  ;;  %v38_v26 = vld [vmem:[%s383_s1 + $0xa8] sm:$0xff] }
   0xa   :  { %129 = vmatpush.msra.mxu2 %v52_v12  ;;  %103 = vmatpush.msra.mxu1 %v51_v13  ;;  %v37_v27 = vld [vmem:[%s383_s1 + $0xa0] sm:$0xff]  ;;  %v36_v28 = vld [vmem:[%s383_s1 + $0x98] sm:$0xff]  ;;  %v35_v29 = vld [vmem:[%s383_s1 + $0x90] sm:$0xff] }
   0xb   :  { %168 = vmatpush.msra.mxu3 %v50_v14  ;;  %77 = vmatpush.msra.mxu0 %v50_v14  ;;  %v34_v30 = vld [vmem:[%s383_s1 + $0x88] sm:$0xff]  ;;  %v33_v31 = vld [vmem:[%s383_s1 + $0x80] sm:$0xff]  ;;  %v32_v32 = vld [vmem:[%s383_s1 + $0x78] sm:$0xff] }
   0xc   :  { %130 = vmatpush.msra.mxu2 %v49_v15  ;;  %104 = vmatpush.msra.mxu1 %v48_v16  ;;  %v31_v33 = vld [vmem:[%s383_s1 + $0x70] sm:$0xff]  ;;  %v30_v34 = vld [vmem:[%s383_s1 + $0x68] sm:$0xff]  ;;  %v29_v35 = vld [vmem:[%s383_s1 + $0x60] sm:$0xff] }
   0xd   :  { %169 = vmatpush.msra.mxu3 %v47_v17  ;;  %78 = vmatpush.msra.mxu0 %v47_v17  ;;  %v28_v36 = vld [vmem:[%s383_s1 + $0x58] sm:$0xff]  ;;  %v27_v37 = vld [vmem:[%s383_s1 + $0x50] sm:$0xff]  ;;  %v26_v38 = vld [vmem:[%s383_s1 + $0x48] sm:$0xff] }
   0xe   :  { %131 = vmatpush.msra.mxu2 %v46_v18  ;;  %105 = vmatpush.msra.mxu1 %v45_v19  ;;  %v25_v39 = vld [vmem:[%s383_s1 + $0x40] sm:$0xff]  ;;  %v24_v40 = vld [vmem:[%s383_s1 + $0x38] sm:$0xff]  ;;  %v23_v41 = vld [vmem:[%s383_s1 + $0x30] sm:$0xff] }
   0xf   :  { %170 = vmatpush.msra.mxu3 %v44_v20  ;;  %79 = vmatpush.msra.mxu0 %v44_v20  ;;  %v22_v42 = vld [vmem:[%s383_s1 + $0x28] sm:$0xff]  ;;  %v21_v43 = vld [vmem:[%s383_s1 + $0x20] sm:$0xff]  ;;  %v20_v44 = vld [vmem:[%s383_s1 + $0x18] sm:$0xff] }
  0x10   :  { %132 = vmatpush.msra.mxu2 %v43_v21  ;;  %106 = vmatpush.msra.mxu1 %v42_v22  ;;  %v19_v45 = vld [vmem:[%s383_s1 + $0x10] sm:$0xff]  ;;  %v14_v46 = vld [vmem:[%s384_s0] sm:$0xff]  ;;  %v18_v47 = vld [vmem:[%s383_s1 + $0x8] sm:$0xff] }
  0x11   :  { %171 = vmatpush.msra.mxu3 %v41_v23  ;;  %80 = vmatpush.msra.mxu0 %v41_v23  ;;  %v17_v48 = vld [vmem:[%s383_s1] sm:$0xff]  ;;  %v15_v49 = vld [vmem:[%s384_s0 + $0x8] sm:$0xff]  ;;  %v16_v50 = vld [vmem:[%s384_s0 + $0x10] sm:$0xff] }
  0x12   :  { %133 = vmatpush.msra.mxu2 %v40_v24  ;;  %107 = vmatpush.msra.mxu1 %v39_v25  ;;  %v65_v51 = vld [vmem:[%s385_s2] sm:$0x7] }
  0x13   :  { %172 = vmatpush.msra.mxu3 %v38_v26  ;;  %81 = vmatpush.msra.mxu0 %v38_v26  ;;  %v68_v52 = vperm.slane %v65_v51, 1  ;;  %v67_v55 = vperm.slane %v65_v51, 0  ;;  %v69_v56 = vperm.slane %v65_v51, 2 }
  0x14   :  { %134 = vmatpush.msra.mxu2 %v37_v27  ;;  %108 = vmatpush.msra.mxu1 %v36_v28 }
  0x15   :  { %173 = vmatpush.msra.mxu3 %v35_v29  ;;  %82 = vmatpush.msra.mxu0 %v35_v29 }
  0x16   :  { %135 = vmatpush.msra.mxu2 %v34_v30  ;;  %109 = vmatpush.msra.mxu1 %v33_v31 }
  0x17   :  { %174 = vmatpush.msra.mxu3 %v32_v32  ;;  %83 = vmatpush.msra.mxu0 %v32_v32 }
  0x18   :  { %136 = vmatpush.msra.mxu2 %v31_v33  ;;  %110 = vmatpush.msra.mxu1 %v30_v34 }
  0x19   :  { %175 = vmatpush.msra.mxu3 %v29_v35  ;;  %84 = vmatpush.msra.mxu0 %v29_v35 }
  0x1a   :  { %137 = vmatpush.msra.mxu2 %v28_v36  ;;  %111 = vmatpush.msra.mxu1 %v27_v37 }
  0x1b   :  { %176 = vmatpush.msra.mxu3 %v26_v38  ;;  %85 = vmatpush.msra.mxu0 %v26_v38 }
  0x1c   :  { %138 = vmatpush.msra.mxu2 %v25_v39  ;;  %112 = vmatpush.msra.mxu1 %v24_v40 }
  0x1d   :  { %177 = vmatpush.msra.mxu3 %v23_v41  ;;  %86 = vmatpush.msra.mxu0 %v23_v41 }
  0x1e   :  { %139 = vmatpush.msra.mxu2 %v22_v42  ;;  %113 = vmatpush.msra.mxu1 %v21_v43 }
  0x1f   :  { %178 = vmatpush.msra.mxu3 %v20_v44  ;;  %87 = vmatpush.msra.mxu0 %v20_v44 }
  0x20   :  { %140 = vmatpush.msra.mxu2 %v19_v45  ;;  %114 = vmatpush.msra.mxu1 %v18_v47 }
  0x21   :  { %141 = vmatmul.f32.vlgmr.msra.gmra.mxu2 %v14_v46  ;;  %115 = vmatmul.f32.vlgmr.msra.gmra.mxu1 %v14_v46 }
  0x22   :  { %179 = vmatpush.msra.mxu3 %v17_v48  ;;  %88 = vmatpush.msra.mxu0 %v17_v48 }
  0x23   :  { %92 = vmatmul.f32.vlgmr.msra.gmra.mxu3 %v15_v49  ;;  %89 = vmatmul.f32.vlgmr.msra.gmra.mxu0 %v14_v46 }
  0x29   :  { %144 = vmatmul.f32.gmra.mxu2 %v15_v49  ;;  %118 = vmatmul.f32.gmra.mxu1 %v15_v49 }
  0x2b   :  { %95 = vmatmul.f32.gmra.mxu3 %v16_v50 }
  0x31   :  { %147 = vmatmul.f32.gmra.mxu2 %v16_v50  ;;  %121 = vmatmul.f32.gmra.mxu1 %v16_v50 }
  0x9e   :  { %v116_v53 = vpop.f32.mrf.mxu1 }
  0x9f   :  { %v117_v54 = vadd.f32 %v116_v53, %v68_v52 }
  0xa0   :  { %v90_v57 = vpop.f32.mrf.mxu0 }
  0xa1   :  { %152 = vst [vmem:[%s386_s3 + $0x8] sm:$0xff] %v117_v54  ;;  %v91_v58 = vadd.f32 %v90_v57, %v67_v55 }
  0xa3   :  { %151 = vst [vmem:[%s386_s3] sm:$0xff] %v91_v58 }
  0xa4   :  { %v142_v59 = vpop.f32.mrf.mxu2 }
  0xa5   :  { %v143_v60 = vadd.f32 %v142_v59, %v69_v56 }
  0xa6   :  { %v93_v61 = vpop.f32.mrf.mxu3  ;;  %v119_v63 = vpop.f32.mrf.mxu1 }
  0xa7   :  { %153 = vst [vmem:[%s386_s3 + $0x10] sm:$0xff] %v143_v60  ;;  %v94_v62 = vadd.f32 %v93_v61, %v67_v55  ;;  %v120_v0 = vadd.f32 %v119_v63, %v68_v52 }
  0xa9   :  { %154 = vst [vmem:[%s386_s3 + $0x18] sm:$0xff] %v94_v62 }
  0xaa   :  { %155 = vst [vmem:[%s386_s3 + $0x20] sm:$0xff] %v120_v0 }
  0xac   :  { %v145_v1 = vpop.f32.mrf.mxu2 }
  0xad   :  { %v146_v2 = vadd.f32 %v145_v1, %v69_v56 }
  0xae   :  { %v96_v3 = vpop.f32.mrf.mxu3  ;;  %v122_v5 = vpop.f32.mrf.mxu1 }
  0xaf   :  { %156 = vst [vmem:[%s386_s3 + $0x28] sm:$0xff] %v146_v2  ;;  %v97_v4 = vadd.f32 %v96_v3, %v67_v55  ;;  %v123_v6 = vadd.f32 %v122_v5, %v68_v52 }
  0xb1   :  { %157 = vst [vmem:[%s386_s3 + $0x30] sm:$0xff] %v97_v4 }
  0xb2   :  { %158 = vst [vmem:[%s386_s3 + $0x38] sm:$0xff] %v123_v6 }
  0xb4   :  { %v148_v7 = vpop.f32.mrf.mxu2 }
  0xb5   :  { %v149_v8 = vadd.f32 %v148_v7, %v69_v56 }
  0xb7   :  { %159 = vst [vmem:[%s386_s3 + $0x40] sm:$0xff] %v149_v8 }

// kernel: dmpnn_forward.12
= control target key start
LH: loop header
LB: loop body
LE: loop exit
PB: predicated region body
PF: predicated region fallthrough
CT: control target
= control target key end

     0   :  { %s282_s2 = inlined_call_operand.vmem [shape: f32[128,128], index: 2, kind: input, shape index: {}]   ;;  %s283_s0 = inlined_call_operand.vmem [shape: f32[40,128], index: 0, kind: input, shape index: {}]   ;;  %s284_s1 = inlined_call_operand.vmem [shape: f32[40,128], index: 1, kind: input, shape index: {}]   ;;  %s285_s3 = inlined_call_operand.vmem [shape: f32[40,128], index: 3, kind: output, shape index: {}]  }
   0x1   :  { %v44_v0 = vld [vmem:[%s282_s2 + $0x78] sm:$0xff]  ;;  %v43_v1 = vld [vmem:[%s282_s2 + $0x70] sm:$0xff]  ;;  %v42_v2 = vld [vmem:[%s282_s2 + $0x68] sm:$0xff] }
   0x2   :  { %113 = vmatpush.msra.mxu3 %v44_v0  ;;  %112 = vmatpush.msra.mxu2 %v44_v0  ;;  %v41_v3 = vld [vmem:[%s282_s2 + $0x60] sm:$0xff]  ;;  %v40_v4 = vld [vmem:[%s282_s2 + $0x58] sm:$0xff]  ;;  %v39_v5 = vld [vmem:[%s282_s2 + $0x50] sm:$0xff] }
   0x3   :  { %45 = vmatpush.msra.mxu0 %v44_v0  ;;  %111 = vmatpush.msra.mxu1 %v44_v0  ;;  %v38_v6 = vld [vmem:[%s282_s2 + $0x48] sm:$0xff]  ;;  %v37_v7 = vld [vmem:[%s282_s2 + $0x40] sm:$0xff]  ;;  %v36_v8 = vld [vmem:[%s282_s2 + $0x38] sm:$0xff] }
   0x4   :  { %116 = vmatpush.msra.mxu3 %v43_v1  ;;  %115 = vmatpush.msra.mxu2 %v43_v1  ;;  %v35_v9 = vld [vmem:[%s282_s2 + $0x30] sm:$0xff]  ;;  %v34_v10 = vld [vmem:[%s282_s2 + $0x28] sm:$0xff]  ;;  %v33_v11 = vld [vmem:[%s282_s2 + $0x20] sm:$0xff] }
   0x5   :  { %46 = vmatpush.msra.mxu0 %v43_v1  ;;  %114 = vmatpush.msra.mxu1 %v43_v1  ;;  %v32_v12 = vld [vmem:[%s282_s2 + $0x18] sm:$0xff]  ;;  %v31_v13 = vld [vmem:[%s282_s2 + $0x10] sm:$0xff]  ;;  %v30_v18 = vld [vmem:[%s282_s2 + $0x8] sm:$0xff] }
   0x6   :  { %119 = vmatpush.msra.mxu3 %v42_v2  ;;  %118 = vmatpush.msra.mxu2 %v42_v2  ;;  %v17_v14 = vld [vmem:[%s283_s0 + $0x18] sm:$0xff]  ;;  %v16_v16 = vld [vmem:[%s283_s0 + $0x10] sm:$0xff]  ;;  %v14_v19 = vld [vmem:[%s283_s0] sm:$0xff] }
   0x7   :  { %47 = vmatpush.msra.mxu0 %v42_v2  ;;  %117 = vmatpush.msra.mxu1 %v42_v2  ;;  %v22_v15 = vld [vmem:[%s284_s1 + $0x18] sm:$0xff]  ;;  %v21_v17 = vld [vmem:[%s284_s1 + $0x10] sm:$0xff]  ;;  %v19_v20 = vld [vmem:[%s284_s1] sm:$0xff] }
   0x8   :  { %122 = vmatpush.msra.mxu3 %v41_v3  ;;  %121 = vmatpush.msra.mxu2 %v41_v3  ;;  %v15_v21 = vld [vmem:[%s283_s0 + $0x8] sm:$0xff]  ;;  %v29_v23 = vld [vmem:[%s282_s2] sm:$0xff]  ;;  %v27_v24 = vmul.f32 %v22_v15, %v17_v14  ;;  %v26_v25 = vmul.f32 %v21_v17, %v16_v16  ;;  %v24_v26 = vmul.f32 %v19_v20, %v14_v19 }
   0x9   :  { %48 = vmatpush.msra.mxu0 %v41_v3  ;;  %120 = vmatpush.msra.mxu1 %v41_v3  ;;  %v20_v22 = vld [vmem:[%s284_s1 + $0x8] sm:$0xff]  ;;  %v18_v28 = vld [vmem:[%s283_s0 + $0x20] sm:$0xff] }
   0xa   :  { %125 = vmatpush.msra.mxu3 %v40_v4  ;;  %124 = vmatpush.msra.mxu2 %v40_v4  ;;  %v25_v27 = vmul.f32 %v20_v22, %v15_v21  ;;  %v23_v29 = vld [vmem:[%s284_s1 + $0x20] sm:$0xff] }
   0xb   :  { %49 = vmatpush.msra.mxu0 %v40_v4  ;;  %123 = vmatpush.msra.mxu1 %v40_v4  ;;  %v28_v30 = vmul.f32 %v23_v29, %v18_v28 }
   0xc   :  { %128 = vmatpush.msra.mxu3 %v39_v5  ;;  %127 = vmatpush.msra.mxu2 %v39_v5 }
   0xd   :  { %50 = vmatpush.msra.mxu0 %v39_v5  ;;  %126 = vmatpush.msra.mxu1 %v39_v5 }
   0xe   :  { %131 = vmatpush.msra.mxu3 %v38_v6  ;;  %130 = vmatpush.msra.mxu2 %v38_v6 }
   0xf   :  { %51 = vmatpush.msra.mxu0 %v38_v6  ;;  %129 = vmatpush.msra.mxu1 %v38_v6 }
  0x10   :  { %134 = vmatpush.msra.mxu3 %v37_v7  ;;  %133 = vmatpush.msra.mxu2 %v37_v7 }
  0x11   :  { %52 = vmatpush.msra.mxu0 %v37_v7  ;;  %132 = vmatpush.msra.mxu1 %v37_v7 }
  0x12   :  { %137 = vmatpush.msra.mxu3 %v36_v8  ;;  %136 = vmatpush.msra.mxu2 %v36_v8 }
  0x13   :  { %53 = vmatpush.msra.mxu0 %v36_v8  ;;  %135 = vmatpush.msra.mxu1 %v36_v8 }
  0x14   :  { %140 = vmatpush.msra.mxu3 %v35_v9  ;;  %139 = vmatpush.msra.mxu2 %v35_v9 }
  0x15   :  { %54 = vmatpush.msra.mxu0 %v35_v9  ;;  %138 = vmatpush.msra.mxu1 %v35_v9 }
  0x16   :  { %143 = vmatpush.msra.mxu3 %v34_v10  ;;  %142 = vmatpush.msra.mxu2 %v34_v10 }
  0x17   :  { %55 = vmatpush.msra.mxu0 %v34_v10  ;;  %141 = vmatpush.msra.mxu1 %v34_v10 }
  0x18   :  { %146 = vmatpush.msra.mxu3 %v33_v11  ;;  %145 = vmatpush.msra.mxu2 %v33_v11 }
  0x19   :  { %56 = vmatpush.msra.mxu0 %v33_v11  ;;  %144 = vmatpush.msra.mxu1 %v33_v11 }
  0x1a   :  { %149 = vmatpush.msra.mxu3 %v32_v12  ;;  %148 = vmatpush.msra.mxu2 %v32_v12 }
  0x1b   :  { %57 = vmatpush.msra.mxu0 %v32_v12  ;;  %147 = vmatpush.msra.mxu1 %v32_v12 }
  0x1c   :  { %152 = vmatpush.msra.mxu3 %v31_v13  ;;  %151 = vmatpush.msra.mxu2 %v31_v13 }
  0x1d   :  { %58 = vmatpush.msra.mxu0 %v31_v13  ;;  %150 = vmatpush.msra.mxu1 %v31_v13 }
  0x1e   :  { %155 = vmatpush.msra.mxu3 %v30_v18  ;;  %154 = vmatpush.msra.mxu2 %v30_v18 }
  0x1f   :  { %59 = vmatpush.msra.mxu0 %v30_v18  ;;  %153 = vmatpush.msra.mxu1 %v30_v18 }
  0x20   :  { %158 = vmatpush.msra.mxu3 %v29_v23  ;;  %157 = vmatpush.msra.mxu2 %v29_v23 }
  0x21   :  { %70 = vmatmul.f32.vlgmr.msra.gmra.mxu3 %v27_v24  ;;  %67 = vmatmul.f32.vlgmr.msra.gmra.mxu2 %v26_v25 }
  0x22   :  { %60 = vmatpush.msra.mxu0 %v29_v23  ;;  %156 = vmatpush.msra.mxu1 %v29_v23 }
  0x23   :  { %61 = vmatmul.f32.vlgmr.msra.gmra.mxu0 %v24_v26  ;;  %64 = vmatmul.f32.vlgmr.msra.gmra.mxu1 %v25_v27 }
  0x29   :  { %73 = vmatmul.f32.gmra.mxu3 %v28_v30 }
  0xa0   :  { %v62_v31 = vpop.f32.mrf.mxu0  ;;  %v65_v32 = vpop.f32.mrf.mxu1 }
  0xa1   :  { %vm77_vm0 = vcmp.gt.f32.partialorder %v62_v31, 0.0  ;;  %v82_v33 = vmul.f32 0.2, %v62_v31  ;;  %vm78_vm1 = vcmp.gt.f32.partialorder %v65_v32, 0.0  ;;  %v83_v34 = vmul.f32 0.2, %v65_v32 }
  0xa3   :  { %v87_v35 = vsel %vm77_vm0, %v62_v31, %v82_v33  ;;  %v88_v36 = vsel %vm78_vm1, %v65_v32, %v83_v34 }
  0xa4   :  { %v71_v37 = vpop.f32.mrf.mxu3  ;;  %v92_v38 = vmul.f32 1.442695, %v87_v35  ;;  %v94_v39 = vmul.f32 1.442695, %v88_v36  ;;  %v68_v40 = vpop.f32.mrf.mxu2 }
  0xa5   :  { %vm80_vm2 = vcmp.gt.f32.partialorder %v71_v37, 0.0  ;;  %v85_v41 = vmul.f32 0.2, %v71_v37  ;;  %vm79_vm3 = vcmp.gt.f32.partialorder %v68_v40, 0.0  ;;  %v84_v42 = vmul.f32 0.2, %v68_v40 }
  0xa6   :  { %159 = vpow2.f32 %v92_v38 }
  0xa7   :  { %v90_v43 = vsel %vm80_vm2, %v71_v37, %v85_v41  ;;  %161 = vpow2.f32 %v94_v39  ;;  %v89_v44 = vsel %vm79_vm3, %v68_v40, %v84_v42 }
  0xa8   :  { %v98_v45 = vmul.f32 1.442695, %v90_v43  ;;  %v96_v46 = vmul.f32 1.442695, %v89_v44 }
  0xaa   :  { %163 = vpow2.f32 %v98_v45 }
  0xab   :  { %165 = vpow2.f32 %v96_v46 }
  0xac   :  { %v160_v47 = vpop.eup %159  ;;  %v74_v48 = vpop.f32.mrf.mxu3 }
  0xad   :  { %v162_v49 = vpop.eup %161  ;;  %102 = vst [vmem:[%s285_s3] sm:$0xff] %v160_v47  ;;  %vm81_vm4 = vcmp.gt.f32.partialorder %v74_v48, 0.0  ;;  %v86_v50 = vmul.f32 0.2, %v74_v48 }
  0xae   :  { %103 = vst [vmem:[%s285_s3 + $0x8] sm:$0xff] %v162_v49 }
  0xaf   :  { %v91_v51 = vsel %vm81_vm4, %v74_v48, %v86_v50 }
  0xb0   :  { %v164_v52 = vpop.eup %163  ;;  %v100_v53 = vmul.f32 1.442695, %v91_v51 }
  0xb1   :  { %v166_v54 = vpop.eup %165  ;;  %105 = vst [vmem:[%s285_s3 + $0x18] sm:$0xff] %v164_v52 }
  0xb2   :  { %104 = vst [vmem:[%s285_s3 + $0x10] sm:$0xff] %v166_v54  ;;  %167 = vpow2.f32 %v100_v53 }
  0xb8   :  { %v168_v55 = vpop.eup %167 }
  0xb9   :  { %106 = vst [vmem:[%s285_s3 + $0x20] sm:$0xff] %v168_v55 }

// kernel: dmpnn_forward.13
= control target key start
LH: loop header
LB: loop body
LE: loop exit
PB: predicated region body
PF: predicated region fallthrough
CT: control target
= control target key end

     0   :  { %s143_s0 = inlined_call_operand.vmem [shape: f32[40,128], index: 0, kind: input, shape index: {}]   ;;  %s144_s1 = inlined_call_operand.vmem [shape: f32[40,128], index: 1, kind: input, shape index: {}]   ;;  %s145_s2 = inlined_call_operand.vmem [shape: f32[40,128], index: 2, kind: input, shape index: {}]   ;;  %s146_s3 = inlined_call_operand.vmem [shape: f32[40,128], index: 3, kind: output, shape index: {}]  }
   0x1   :  { %v29_v0 = vld [vmem:[%s145_s2] sm:$0xff]  ;;  %v30_v3 = vld [vmem:[%s145_s2 + $0x8] sm:$0xff]  ;;  %v31_v6 = vld [vmem:[%s145_s2 + $0x10] sm:$0xff] }
   0x2   :  { %v14_v1 = vld [vmem:[%s143_s0] sm:$0xff]  ;;  %53 = vrcp.f32 %v29_v0  ;;  %v15_v4 = vld [vmem:[%s143_s0 + $0x8] sm:$0xff]  ;;  %v16_v7 = vld [vmem:[%s143_s0 + $0x10] sm:$0xff] }
   0x3   :  { %v19_v2 = vld [vmem:[%s144_s1] sm:$0xff]  ;;  %v20_v5 = vld [vmem:[%s144_s1 + $0x8] sm:$0xff]  ;;  %55 = vrcp.f32 %v30_v3  ;;  %v21_v8 = vld [vmem:[%s144_s1 + $0x10] sm:$0xff] }
   0x4   :  { %57 = vrcp.f32 %v31_v6  ;;  %v32_v9 = vld [vmem:[%s145_s2 + $0x18] sm:$0xff]  ;;  %v24_v10 = vmul.f32 %v19_v2, %v14_v1  ;;  %v33_v13 = vld [vmem:[%s145_s2 + $0x20] sm:$0xff]  ;;  %v25_v14 = vmul.f32 %v20_v5, %v15_v4  ;;  %v26_v17 = vmul.f32 %v21_v8, %v16_v7 }
   0x5   :  { %v17_v11 = vld [vmem:[%s143_s0 + $0x18] sm:$0xff]  ;;  %59 = vrcp.f32 %v32_v9  ;;  %v18_v15 = vld [vmem:[%s143_s0 + $0x20] sm:$0xff] }
   0x6   :  { %v22_v12 = vld [vmem:[%s144_s1 + $0x18] sm:$0xff]  ;;  %v23_v16 = vld [vmem:[%s144_s1 + $0x20] sm:$0xff]  ;;  %61 = vrcp.f32 %v33_v13 }
   0x7   :  { %v27_v19 = vmul.f32 %v22_v12, %v17_v11  ;;  %v28_v22 = vmul.f32 %v23_v16, %v18_v15 }
   0x8   :  { %v54_v18 = vpop.eup %53 }
   0x9   :  { %v56_v20 = vpop.eup %55  ;;  %v39_v21 = vmul.f32 %v54_v18, %v24_v10 }
   0xa   :  { %v58_v23 = vpop.eup %57  ;;  %v40_v24 = vmul.f32 %v56_v20, %v25_v14 }
   0xb   :  { %v60_v25 = vpop.eup %59  ;;  %44 = vst [vmem:[%s146_s3] sm:$0xff] %v39_v21  ;;  %v41_v26 = vmul.f32 %v58_v23, %v26_v17 }
   0xc   :  { %v62_v27 = vpop.eup %61  ;;  %45 = vst [vmem:[%s146_s3 + $0x8] sm:$0xff] %v40_v24  ;;  %v42_v28 = vmul.f32 %v60_v25, %v27_v19 }
   0xd   :  { %46 = vst [vmem:[%s146_s3 + $0x10] sm:$0xff] %v41_v26  ;;  %v43_v29 = vmul.f32 %v62_v27, %v28_v22 }
   0xe   :  { %47 = vst [vmem:[%s146_s3 + $0x18] sm:$0xff] %v42_v28 }
   0xf   :  { %48 = vst [vmem:[%s146_s3 + $0x20] sm:$0xff] %v43_v29 }

// kernel: dmpnn_forward.14
= control target key start
LH: loop header
LB: loop body
LE: loop exit
PB: predicated region body
PF: predicated region fallthrough
CT: control target
= control target key end

     0   :  { %s335_s2 = inlined_call_operand.vmem [shape: f32[128,128], index: 2, kind: input, shape index: {}]   ;;  %s336_s4 = inlined_call_operand.vmem [shape: f32[128,128], index: 4, kind: input, shape index: {}]   ;;  %s337_s3 = inlined_call_operand.vmem [shape: f32[1,128], index: 3, kind: input, shape index: {}]   ;;  %s338_s1 = inlined_call_operand.vmem [shape: f32[24,128], index: 1, kind: input, shape index: {}]   ;;  %s339_s5 = inlined_call_operand.vmem [shape: f32[1,128], index: 5, kind: input, shape index: {}]   ;;  %s340_s0 = inlined_call_operand.vmem [shape: f32[24,128], index: 0, kind: input, shape index: {}]   ;;  %s341_s6 = inlined_call_operand.vmem [shape: f32[24,128], index: 6, kind: output, shape index: {}]  }
   0x1   :  { %v41_v0 = vld [vmem:[%s335_s2 + $0x78] sm:$0xff]  ;;  %v40_v1 = vld [vmem:[%s335_s2 + $0x70] sm:$0xff]  ;;  %v39_v2 = vld [vmem:[%s335_s2 + $0x68] sm:$0xff] }
   0x2   :  { %137 = vmatpush.msra.mxu2 %v41_v0  ;;  %46 = vmatpush.msra.mxu0 %v41_v0  ;;  %v38_v3 = vld [vmem:[%s335_s2 + $0x60] sm:$0xff]  ;;  %v37_v4 = vld [vmem:[%s335_s2 + $0x58] sm:$0xff]  ;;  %v36_v5 = vld [vmem:[%s335_s2 + $0x50] sm:$0xff] }
   0x3   :  { %v90_v6 = vld [vmem:[%s336_s4 + $0x78] sm:$0xff]  ;;  %v89_v7 = vld [vmem:[%s336_s4 + $0x70] sm:$0xff]  ;;  %v35_v8 = vld [vmem:[%s335_s2 + $0x48] sm:$0xff] }
   0x4   :  { %138 = vmatpush.msra.mxu2 %v40_v1  ;;  %47 = vmatpush.msra.mxu0 %v40_v1  ;;  %v88_v9 = vld [vmem:[%s336_s4 + $0x68] sm:$0xff]  ;;  %v34_v10 = vld [vmem:[%s335_s2 + $0x40] sm:$0xff]  ;;  %v33_v12 = vld [vmem:[%s335_s2 + $0x38] sm:$0xff] }
   0x5   :  { %153 = vmatpush.msra.mxu3 %v90_v6  ;;  %95 = vmatpush.msra.mxu1 %v90_v6  ;;  %v87_v11 = vld [vmem:[%s336_s4 + $0x60] sm:$0xff]  ;;  %v86_v13 = vld [vmem:[%s336_s4 + $0x58] sm:$0xff]  ;;  %v32_v14 = vld [vmem:[%s335_s2 + $0x30] sm:$0xff] }
   0x6   :  { %139 = vmatpush.msra.mxu2 %v39_v2  ;;  %48 = vmatpush.msra.mxu0 %v39_v2  ;;  %v85_v15 = vld [vmem:[%s336_s4 + $0x50] sm:$0xff]  ;;  %v31_v16 = vld [vmem:[%s335_s2 + $0x28] sm:$0xff]  ;;  %v30_v18 = vld [vmem:[%s335_s2 + $0x20] sm:$0xff] }
   0x7   :  { %154 = vmatpush.msra.mxu3 %v89_v7  ;;  %96 = vmatpush.msra.mxu1 %v89_v7  ;;  %v84_v17 = vld [vmem:[%s336_s4 + $0x48] sm:$0xff]  ;;  %v83_v19 = vld [vmem:[%s336_s4 + $0x40] sm:$0xff]  ;;  %v29_v20 = vld [vmem:[%s335_s2 + $0x18] sm:$0xff] }
   0x8   :  { %140 = vmatpush.msra.mxu2 %v38_v3  ;;  %49 = vmatpush.msra.mxu0 %v38_v3  ;;  %v82_v21 = vld [vmem:[%s336_s4 + $0x38] sm:$0xff]  ;;  %v28_v22 = vld [vmem:[%s335_s2 + $0x10] sm:$0xff]  ;;  %v27_v24 = vld [vmem:[%s335_s2 + $0x8] sm:$0xff] }
   0x9   :  { %155 = vmatpush.msra.mxu3 %v88_v9  ;;  %97 = vmatpush.msra.mxu1 %v88_v9  ;;  %v81_v23 = vld [vmem:[%s336_s4 + $0x30] sm:$0xff]  ;;  %v80_v25 = vld [vmem:[%s336_s4 + $0x28] sm:$0xff]  ;;  %v26_v26 = vld [vmem:[%s335_s2] sm:$0xff] }
   0xa   :  { %141 = vmatpush.msra.mxu2 %v37_v4  ;;  %50 = vmatpush.msra.mxu0 %v37_v4  ;;  %v24_v27 = vld [vmem:[%s338_s1 + $0x8] sm:$0xff]  ;;  %v23_v28 = vld [vmem:[%s338_s1] sm:$0xff]  ;;  %v78_v30 = vld [vmem:[%s336_s4 + $0x18] sm:$0xff] }
   0xb   :  { %156 = vmatpush.msra.mxu3 %v87_v11  ;;  %98 = vmatpush.msra.mxu1 %v87_v11  ;;  %v79_v29 = vld [vmem:[%s336_s4 + $0x20] sm:$0xff]  ;;  %v25_v31 = vld [vmem:[%s338_s1 + $0x10] sm:$0xff]  ;;  %v76_v33 = vld [vmem:[%s336_s4 + $0x8] sm:$0xff] }
   0xc   :  { %142 = vmatpush.msra.mxu2 %v36_v5  ;;  %51 = vmatpush.msra.mxu0 %v36_v5  ;;  %v77_v32 = vld [vmem:[%s336_s4 + $0x10] sm:$0xff]  ;;  %v75_v34 = vld [vmem:[%s336_s4] sm:$0xff]  ;;  %v125_v53 = vld [vmem:[%s340_s0 + $0x8] sm:$0xff] }
   0xd   :  { %157 = vmatpush.msra.mxu3 %v86_v13  ;;  %99 = vmatpush.msra.mxu1 %v86_v13  ;;  %v169_v35 = vld [vmem:[%s337_s3] ss:$0 sm:$0xff]  ;;  %v126_v58 = vld [vmem:[%s340_s0 + $0x10] sm:$0xff] }
   0xe   :  { %143 = vmatpush.msra.mxu2 %v35_v8  ;;  %52 = vmatpush.msra.mxu0 %v35_v8  ;;  %v170_v45 = vld [vmem:[%s339_s5] ss:$0 sm:$0xff] }
   0xf   :  { %158 = vmatpush.msra.mxu3 %v85_v15  ;;  %100 = vmatpush.msra.mxu1 %v85_v15  ;;  %v124_v48 = vld [vmem:[%s340_s0] sm:$0xff] }
  0x10   :  { %144 = vmatpush.msra.mxu2 %v34_v10  ;;  %53 = vmatpush.msra.mxu0 %v34_v10 }
  0x11   :  { %159 = vmatpush.msra.mxu3 %v84_v17  ;;  %101 = vmatpush.msra.mxu1 %v84_v17 }
  0x12   :  { %145 = vmatpush.msra.mxu2 %v33_v12  ;;  %54 = vmatpush.msra.mxu0 %v33_v12 }
  0x13   :  { %160 = vmatpush.msra.mxu3 %v83_v19  ;;  %102 = vmatpush.msra.mxu1 %v83_v19 }
  0x14   :  { %146 = vmatpush.msra.mxu2 %v32_v14  ;;  %55 = vmatpush.msra.mxu0 %v32_v14 }
  0x15   :  { %161 = vmatpush.msra.mxu3 %v82_v21  ;;  %103 = vmatpush.msra.mxu1 %v82_v21 }
  0x16   :  { %147 = vmatpush.msra.mxu2 %v31_v16  ;;  %56 = vmatpush.msra.mxu0 %v31_v16 }
  0x17   :  { %162 = vmatpush.msra.mxu3 %v81_v23  ;;  %104 = vmatpush.msra.mxu1 %v81_v23 }
  0x18   :  { %148 = vmatpush.msra.mxu2 %v30_v18  ;;  %57 = vmatpush.msra.mxu0 %v30_v18 }
  0x19   :  { %163 = vmatpush.msra.mxu3 %v80_v25  ;;  %105 = vmatpush.msra.mxu1 %v80_v25 }
  0x1a   :  { %149 = vmatpush.msra.mxu2 %v29_v20  ;;  %58 = vmatpush.msra.mxu0 %v29_v20 }
  0x1b   :  { %164 = vmatpush.msra.mxu3 %v79_v29  ;;  %106 = vmatpush.msra.mxu1 %v79_v29 }
  0x1c   :  { %150 = vmatpush.msra.mxu2 %v28_v22  ;;  %59 = vmatpush.msra.mxu0 %v28_v22 }
  0x1d   :  { %165 = vmatpush.msra.mxu3 %v78_v30  ;;  %107 = vmatpush.msra.mxu1 %v78_v30 }
  0x1e   :  { %151 = vmatpush.msra.mxu2 %v27_v24  ;;  %60 = vmatpush.msra.mxu0 %v27_v24 }
  0x1f   :  { %166 = vmatpush.msra.mxu3 %v77_v32  ;;  %108 = vmatpush.msra.mxu1 %v77_v32 }
  0x20   :  { %152 = vmatpush.msra.mxu2 %v26_v26  ;;  %61 = vmatpush.msra.mxu0 %v26_v26 }
  0x21   :  { %65 = vmatmul.f32.vlgmr.msra.gmra.mxu2 %v24_v27  ;;  %62 = vmatmul.f32.vlgmr.msra.gmra.mxu0 %v23_v28 }
  0x22   :  { %167 = vmatpush.msra.mxu3 %v76_v33  ;;  %109 = vmatpush.msra.mxu1 %v76_v33 }
  0x24   :  { %168 = vmatpush.msra.mxu3 %v75_v34  ;;  %110 = vmatpush.msra.mxu1 %v75_v34 }
  0x29   :  { %68 = vmatmul.f32.gmra.mxu2 %v25_v31 }
  0x9e   :  { %v63_v36 = vpop.f32.mrf.mxu0 }
  0x9f   :  { %v64_v37 = vadd.f32 %v169_v35, %v63_v36 }
  0xa1   :  { %v72_v38 = vmax.f32 %v64_v37, 0.0 }
  0xa3   :  { %111 = vmatmul.f32.vlgmr.msra.gmra.mxu1 %v72_v38 }
  0xa4   :  { %v66_v39 = vpop.f32.mrf.mxu2 }
  0xa5   :  { %v67_v40 = vadd.f32 %v169_v35, %v66_v39 }
  0xa7   :  { %v73_v41 = vmax.f32 %v67_v40, 0.0 }
  0xa9   :  { %114 = vmatmul.f32.vlgmr.msra.gmra.mxu3 %v73_v41 }
  0xac   :  { %v69_v42 = vpop.f32.mrf.mxu2 }
  0xad   :  { %v70_v43 = vadd.f32 %v169_v35, %v69_v42 }
  0xaf   :  { %v74_v44 = vmax.f32 %v70_v43, 0.0 }
  0xb1   :  { %117 = vmatmul.f32.gmra.mxu3 %v74_v44 }
 0x120   :  { %v112_v46 = vpop.f32.mrf.mxu1 }
 0x121   :  { %v113_v47 = vadd.f32 %v170_v45, %v112_v46 }
 0x123   :  { %v121_v49 = vmax.f32 %v113_v47, 0.0 }
 0x125   :  { %v127_v50 = vadd.f32 %v124_v48, %v121_v49 }
 0x127   :  { %130 = vst [vmem:[%s341_s6] sm:$0xff] %v127_v50 }
 0x12c   :  { %v115_v51 = vpop.f32.mrf.mxu3 }
 0x12d   :  { %v116_v52 = vadd.f32 %v170_v45, %v115_v51 }
 0x12f   :  { %v122_v54 = vmax.f32 %v116_v52, 0.0 }
 0x131   :  { %v128_v55 = vadd.f32 %v125_v53, %v122_v54 }
 0x133   :  { %131 = vst [vmem:[%s341_s6 + $0x8] sm:$0xff] %v128_v55 }
 0x134   :  { %v118_v56 = vpop.f32.mrf.mxu3 }
 0x135   :  { %v119_v57 = vadd.f32 %v170_v45, %v118_v56 }
 0x137   :  { %v123_v59 = vmax.f32 %v119_v57, 0.0 }
 0x139   :  { %v129_v60 = vadd.f32 %v126_v58, %v123_v59 }
 0x13b   :  { %132 = vst [vmem:[%s341_s6 + $0x10] sm:$0xff] %v129_v60 }

// kernel: dmpnn_forward.19
= control target key start
LH: loop header
LB: loop body
LE: loop exit
PB: predicated region body
PF: predicated region fallthrough
CT: control target
= control target key end

     0   :  { %s322_s0 = inlined_call_operand.vmem [shape: f32[16,256], index: 0, kind: input, shape index: {}]   ;;  %s323_s1 = inlined_call_operand.vmem [shape: f32[256,128], index: 1, kind: input, shape index: {}]   ;;  %s324_s2 = inlined_call_operand.vmem [shape: f32[1,128], index: 2, kind: input, shape index: {}]   ;;  %s325_s3 = inlined_call_operand.hbm [shape: f32[16,128], index: 3, kind: output, shape index: {}]  }
   0x1   :  { %v34_v0 = vld [vmem:[%s323_s1 + $0x78] sm:$0xff]  ;;  %v33_v1 = vld [vmem:[%s323_s1 + $0x70] sm:$0xff]  ;;  %v32_v4 = vld [vmem:[%s323_s1 + $0x68] sm:$0xff] }
   0x2   :  { %v50_v2 = vld [vmem:[%s323_s1 + $0xf8] sm:$0xff]  ;;  %123 = vmatpush.msra.mxu2 %v34_v0  ;;  %v49_v3 = vld [vmem:[%s323_s1 + $0xf0] sm:$0xff]  ;;  %55 = vmatpush.msra.mxu0 %v34_v0  ;;  %v48_v5 = vld [vmem:[%s323_s1 + $0xe8] sm:$0xff] }
   0x3   :  { %139 = vmatpush.msra.mxu3 %v50_v2  ;;  %78 = vmatpush.msra.mxu1 %v50_v2  ;;  %v31_v6 = vld [vmem:[%s323_s1 + $0x60] sm:$0xff]  ;;  %v30_v8 = vld [vmem:[%s323_s1 + $0x58] sm:$0xff]  ;;  %v29_v10 = vld [vmem:[%s323_s1 + $0x50] sm:$0xff] }
   0x4   :  { %124 = vmatpush.msra.mxu2 %v33_v1  ;;  %56 = vmatpush.msra.mxu0 %v33_v1  ;;  %v47_v7 = vld [vmem:[%s323_s1 + $0xe0] sm:$0xff]  ;;  %v46_v9 = vld [vmem:[%s323_s1 + $0xd8] sm:$0xff]  ;;  %v45_v11 = vld [vmem:[%s323_s1 + $0xd0] sm:$0xff] }
   0x5   :  { %140 = vmatpush.msra.mxu3 %v49_v3  ;;  %79 = vmatpush.msra.mxu1 %v49_v3  ;;  %v28_v12 = vld [vmem:[%s323_s1 + $0x48] sm:$0xff]  ;;  %v27_v14 = vld [vmem:[%s323_s1 + $0x40] sm:$0xff] }
   0x6   :  { %125 = vmatpush.msra.mxu2 %v32_v4  ;;  %57 = vmatpush.msra.mxu0 %v32_v4  ;;  %v44_v13 = vld [vmem:[%s323_s1 + $0xc8] sm:$0xff]  ;;  %v43_v15 = vld [vmem:[%s323_s1 + $0xc0] sm:$0xff] }
   0x7   :  { %141 = vmatpush.msra.mxu3 %v48_v5  ;;  %80 = vmatpush.msra.mxu1 %v48_v5 }
   0x8   :  { %126 = vmatpush.msra.mxu2 %v31_v6  ;;  %58 = vmatpush.msra.mxu0 %v31_v6 }
   0x9   :  { %142 = vmatpush.msra.mxu3 %v47_v7  ;;  %81 = vmatpush.msra.mxu1 %v47_v7 }
   0xa   :  { %127 = vmatpush.msra.mxu2 %v30_v8  ;;  %59 = vmatpush.msra.mxu0 %v30_v8 }
   0xb   :  { %143 = vmatpush.msra.mxu3 %v46_v9  ;;  %82 = vmatpush.msra.mxu1 %v46_v9 }
   0xc   :  { %128 = vmatpush.msra.mxu2 %v29_v10  ;;  %60 = vmatpush.msra.mxu0 %v29_v10 }
   0xd   :  { %144 = vmatpush.msra.mxu3 %v45_v11  ;;  %83 = vmatpush.msra.mxu1 %v45_v11 }
   0xe   :  { %8 = vsyncpa [#allocation3], 0  ;;  %129 = vmatpush.msra.mxu2 %v28_v12  ;;  %v26_v16 = vld [vmem:[%s323_s1 + $0x38] sm:$0xff]  ;;  %61 = vmatpush.msra.mxu0 %v28_v12  ;;  %v25_v18 = vld [vmem:[%s323_s1 + $0x30] sm:$0xff]  ;;  %s185_s4 = smov [#allocation2]   ;;  %s111_s7 = sshll.u32 %s325_s3, 4  ;;  %s112_s7 = int_to_ptr.hbm [resolvable:$true] %s111_s7 }
   0xf   :  { %145 = vmatpush.msra.mxu3 %v44_v13  ;;  %v42_v17 = vld [vmem:[%s323_s1 + $0xb8] sm:$0xff]  ;;  %84 = vmatpush.msra.mxu1 %v44_v13  ;;  %v41_v19 = vld [vmem:[%s323_s1 + $0xb0] sm:$0xff]  ;;  %v24_v20 = vld [vmem:[%s323_s1 + $0x28] sm:$0xff]  ;;  %s187_s8 = smov 8  }
  0x10   :  { %130 = vmatpush.msra.mxu2 %v27_v14  ;;  %62 = vmatpush.msra.mxu0 %v27_v14  ;;  %v40_v21 = vld [vmem:[%s323_s1 + $0xa8] sm:$0xff]  ;;  %v23_v22 = vld [vmem:[%s323_s1 + $0x20] sm:$0xff]  ;;  %v22_v24 = vld [vmem:[%s323_s1 + $0x18] sm:$0xff] }
  0x11   :  { %146 = vmatpush.msra.mxu3 %v43_v15  ;;  %85 = vmatpush.msra.mxu1 %v43_v15  ;;  %v39_v23 = vld [vmem:[%s323_s1 + $0xa0] sm:$0xff]  ;;  %v38_v25 = vld [vmem:[%s323_s1 + $0x98] sm:$0xff]  ;;  %v21_v26 = vld [vmem:[%s323_s1 + $0x10] sm:$0xff] }
  0x12   :  { %131 = vmatpush.msra.mxu2 %v26_v16  ;;  %63 = vmatpush.msra.mxu0 %v26_v16  ;;  %v37_v27 = vld [vmem:[%s323_s1 + $0x90] sm:$0xff]  ;;  %v20_v28 = vld [vmem:[%s323_s1 + $0x8] sm:$0xff]  ;;  %v19_v30 = vld [vmem:[%s323_s1] sm:$0xff] }
  0x13   :  { %147 = vmatpush.msra.mxu3 %v42_v17  ;;  %86 = vmatpush.msra.mxu1 %v42_v17  ;;  %v36_v29 = vld [vmem:[%s323_s1 + $0x88] sm:$0xff]  ;;  %v35_v31 = vld [vmem:[%s323_s1 + $0x80] sm:$0xff]  ;;  %v17_v32 = vld [vmem:[%s322_s0 + $0x10] sm:$0xff] }
  0x14   :  { %132 = vmatpush.msra.mxu2 %v25_v18  ;;  %64 = vmatpush.msra.mxu0 %v25_v18  ;;  %v18_v33 = vld [vmem:[%s322_s0 + $0x18] sm:$0xff]  ;;  %v15_v34 = vld [vmem:[%s322_s0] sm:$0xff]  ;;  %v16_v35 = vld [vmem:[%s322_s0 + $0x8] sm:$0xff]  ;;  %s109_s0 = sshll.u32 %s185_s4, 4  ;;  %s110_s0 = int_to_ptr.vmem [resolvable:$true] %s109_s0 }
  0x15   :  { %148 = vmatpush.msra.mxu3 %v41_v19  ;;  %87 = vmatpush.msra.mxu1 %v41_v19  ;;  %v158_v36 = vld [vmem:[%s324_s2] ss:$0 sm:$0xff]  ;;  %s186_s2 = smov 128  }
  0x16   :  { %133 = vmatpush.msra.mxu2 %v24_v20  ;;  %65 = vmatpush.msra.mxu0 %v24_v20 }
  0x17   :  { %149 = vmatpush.msra.mxu3 %v40_v21  ;;  %88 = vmatpush.msra.mxu1 %v40_v21 }
  0x18   :  { %134 = vmatpush.msra.mxu2 %v23_v22  ;;  %66 = vmatpush.msra.mxu0 %v23_v22 }
  0x19   :  { %150 = vmatpush.msra.mxu3 %v39_v23  ;;  %89 = vmatpush.msra.mxu1 %v39_v23 }
  0x1a   :  { %135 = vmatpush.msra.mxu2 %v22_v24  ;;  %67 = vmatpush.msra.mxu0 %v22_v24 }
  0x1b   :  { %151 = vmatpush.msra.mxu3 %v38_v25  ;;  %90 = vmatpush.msra.mxu1 %v38_v25 }
  0x1c   :  { %136 = vmatpush.msra.mxu2 %v21_v26  ;;  %68 = vmatpush.msra.mxu0 %v21_v26 }
  0x1d   :  { %152 = vmatpush.msra.mxu3 %v37_v27  ;;  %91 = vmatpush.msra.mxu1 %v37_v27 }
  0x1e   :  { %137 = vmatpush.msra.mxu2 %v20_v28  ;;  %69 = vmatpush.msra.mxu0 %v20_v28 }
  0x1f   :  { %153 = vmatpush.msra.mxu3 %v36_v29  ;;  %92 = vmatpush.msra.mxu1 %v36_v29 }
  0x20   :  { %138 = vmatpush.msra.mxu2 %v19_v30  ;;  %70 = vmatpush.msra.mxu0 %v19_v30 }
  0x21   :  { %154 = vmatpush.msra.mxu3 %v35_v31  ;;  %74 = vmatmul.f32.vlgmr.msra.gmra.mxu2 %v17_v32 }
  0x22   :  { %97 = vmatmul.f32.vlgmr.msra.gmra.mxu3 %v18_v33  ;;  %93 = vmatpush.msra.mxu1 %v35_v31 }
  0x23   :  { %71 = vmatmul.f32.vlgmr.msra.gmra.mxu0 %v15_v34  ;;  %94 = vmatmul.f32.vlgmr.msra.gmra.mxu1 %v16_v35 }
  0xa0   :  { %v72_v37 = vpop.f32.mrf.mxu0  ;;  %v95_v38 = vpop.f32.mrf.mxu1 }
  0xa1   :  { %v73_v39 = vadd.f32 %v158_v36, %v72_v37 }
  0xa3   :  { %v96_v40 = vadd.f32 %v95_v38, %v73_v39 }
  0xa4   :  { %v75_v41 = vpop.f32.mrf.mxu2 }
  0xa5   :  { %v98_v42 = vpop.f32.mrf.mxu3  ;;  %v76_v43 = vadd.f32 %v158_v36, %v75_v41  ;;  %v101_v44 = vmax.f32 %v96_v40, 0.0 }
  0xa7   :  { %103 = vst [vmem:[#allocation2] sm:$0xff] %v101_v44  ;;  %v99_v45 = vadd.f32 %v98_v42, %v76_v43 }
  0xa9   :  { %v102_v46 = vmax.f32 %v99_v45, 0.0 }
  0xab   :  { %104 = vst [vmem:[#allocation2 + $0x8] sm:$0xff] %v102_v46 }
  0xac   :  { %117 = dma.vmem_to_hbm [thread:$0]  %s110_s0, 256, %s112_s7, [#allocation3], %s186_s2, %s186_s2, %s187_s8  }
  0xad   :  { %183 = dma.done.wait [#allocation3], 256  }
  0xae   :  { %184 = vsyncadd [#allocation3], 4294967040 }
  0xaf   :  { %122 = vsyncpa [#allocation3], 1 }

</bundles_post_ra>
